<compile_context>
chip_gen: v5e
topology: v5e:2x2
jax: 0.10.0
libtpu: 0.0.40
codegen_flags: <defaults>
</compile_context>

<pallas_src>
import functools

import numpy as np
import jax
import jax.numpy as jnp
from jax.experimental import pallas as pl
from jax.experimental.pallas import tpu as pltpu


# ------------------------------------------------------------------ kernel

def actor1_fused_kernel(nx, ny, data_nums, d_model,
                        alpha_ref, x_ref, y_ref, w_ref, logits_ref, z_ref):
    f32 = jnp.float32
    alpha = alpha_ref[0, 0]

    P1 = (nx * (nx - 1)) // 2            # number of (j<k) pairs within x
    S = nx + P1 + ny                     # rows of the stacked operand E
    nxy = nx + ny
    d = d_model

    # ---- row offsets into the packed weight slab ---------------------------
    R_REDW = 0                           # (data_nums, d)  reduction weight
    R_WP3 = R_REDW + data_nums           # (d, d)  (W_ffn + I)^3
    R_WP2 = R_WP3 + d                    # (d, d)  (W_ffn + I)^2
    R_WP1 = R_WP2 + d                    # (d, d)  (W_ffn + I)
    R_Q1W = R_WP1 + d                    # (d, d)  QNet fc1 weight (transposed)
    R_GAMMA = R_Q1W + d
    R_BETA = R_GAMMA + 1
    R_REDB = R_BETA + 1
    R_BCH = R_REDB + 1                   # folded chain bias
    R_Q1B = R_BCH + 1
    R_Q2B = R_Q1B + 1
    R_Q2W = R_Q2B + 1                    # (2, d)  QNet out weight (torch layout)
    R_GX = R_Q2W + 2                     # (S, nx) selector: identity + pair rows
    R_GY = R_GX + S                      # (S, ny) selector: identity on y rows
    R_WBIG = R_GY + S                    # (S, d)  per-row bilinear weights wx|wxy|wy

    gamma = w_ref[R_GAMMA:R_GAMMA + 1, 0:data_nums]
    beta = w_ref[R_BETA:R_BETA + 1, 0:data_nums]
    red_b = w_ref[R_REDB:R_REDB + 1, :]
    b_chain = w_ref[R_BCH:R_BCH + 1, :]
    q1_b = w_ref[R_Q1B:R_Q1B + 1, :]
    q2_b = w_ref[R_Q2B:R_Q2B + 1, 0:2]
    red_w = w_ref[R_REDW:R_REDW + data_nums, :]

    def dot_nt(a, b):    # a @ b.T via dot_general (MXU-native transposed RHS)
        return jax.lax.dot_general(a, b, (((1,), (1,)), ((), ())),
                                   preferred_element_type=f32)

    # ---- embed per input: LayerNorm -> Linear -> nan->0 --------------------
    def ln_embed(inp):
        mean = jnp.mean(inp, axis=-1, keepdims=True)
        var = jnp.mean((inp - mean) ** 2, axis=-1, keepdims=True)   # biased
        xn = (inp - mean) * jax.lax.rsqrt(var + 1e-5) * gamma + beta
        e = jnp.dot(xn, red_w, preferred_element_type=f32) + red_b
        return jnp.where(jnp.isnan(e), 0.0, e)

    emb_x = ln_embed(x_ref[...])                     # (nx, d)
    emb_y = ln_embed(y_ref[...])                     # (ny, d)

    # ---- i == 0: z0 = mean over rows of [emb_x ; emb_y] --------------------
    z0 = (jnp.sum(emb_x, axis=0, keepdims=True)
          + jnp.sum(emb_y, axis=0, keepdims=True)) * (1.0 / float(nxy))

    # ---- stacked operand E = [emb_x ; emb_x[j]+emb_x[k] (j<k) ; emb_y] -----
    Gx = w_ref[R_GX:R_GX + S, 0:nx]                  # (S, nx)
    Gy = w_ref[R_GY:R_GY + S, 0:ny]                  # (S, ny)
    E = (jnp.dot(Gx, emb_x, preferred_element_type=f32)
         + jnp.dot(Gy, emb_y, preferred_element_type=f32))          # (S, d)

    # ---- batched score & cosine matmuls (4 independent MXU pushes) ---------
    w_big = w_ref[R_WBIG:R_WBIG + S, :]              # per-row wx / wxy / wy
    Ew = E * w_big
    inv_e = jax.lax.rsqrt(jnp.sum(E * E, axis=-1, keepdims=True))
    En = E * inv_e
    emb_xn = emb_x * jax.lax.rsqrt(jnp.sum(emb_x * emb_x, axis=-1, keepdims=True))
    emb_yn = emb_y * jax.lax.rsqrt(jnp.sum(emb_y * emb_y, axis=-1, keepdims=True))

    Rs_x = dot_nt(Ew, emb_x)                         # (S, nx) raw bilinear scores
    Rs_y = dot_nt(Ew, emb_y)                         # (S, ny)
    Rc_x = dot_nt(En, emb_xn)                        # (S, nx) cosine similarities
    Rc_y = dot_nt(En, emb_yn)                        # (S, ny)

    NEG = f32(-1e30)

    def softmax_sums(score, cos, use_triu):
        # cos-masked pairs keep score 0.0 (still inside the softmax), invalid
        # (j >= k) pairs get a big-negative score -> exp underflows to 0.
        s = jnp.where(cos < alpha, 0.0, score)
        if use_triu:
            ri = jax.lax.broadcasted_iota(jnp.int32, s.shape, 0)
            ci = jax.lax.broadcasted_iota(jnp.int32, s.shape, 1)
            s = jnp.where(ci > ri, s, NEG)
        m = jnp.max(jnp.max(s, axis=-1, keepdims=True), axis=0, keepdims=True)
        e = jnp.exp(s - m)
        denom = jnp.sum(jnp.sum(e, axis=-1, keepdims=True), axis=0, keepdims=True)
        a = e / denom
        return (jnp.sum(a, axis=-1, keepdims=True),   # weight per left row  (P,1)
                jnp.sum(a, axis=0, keepdims=True))    # weight per right row (1,Q)

    i0, i1, i2 = nx, nx + P1, S
    rw1, cw1 = softmax_sums(Rs_x[0:i0, :], Rc_x[0:i0, :], True)    # x  vs x
    rw2, cw2 = softmax_sums(Rs_y[i0:i1, :], Rc_y[i0:i1, :], False)  # xp vs y
    rw3, cw3 = softmax_sums(Rs_y[i1:i2, :], Rc_y[i1:i2, :], True)   # y  vs y

    emb_xp = E[i0:i1, :]                              # within-x pair sums
    c1 = (jnp.sum(rw1 * emb_x, axis=0, keepdims=True)
          + jnp.dot(cw1, emb_x, preferred_element_type=f32))
    c2 = (jnp.sum(rw2 * emb_xp, axis=0, keepdims=True)
          + jnp.dot(cw2, emb_y, preferred_element_type=f32))
    c3 = (jnp.sum(rw3 * emb_y, axis=0, keepdims=True)
          + jnp.dot(cw3, emb_y, preferred_element_type=f32))

    # ---- collapsed residual-FFN chain ---------------------------------------
    # z3 = (z0+c1)@Wp^3 + c2@Wp^2 + c3@Wp + b@(Wp^2+Wp) + b,  Wp = W_ffn + I.
    # (Mathematically identical to 3x  z = ffn_x(c+z) + (c+z); powers + folded
    #  bias are precomputed in the wrapper so the 3 pushes are independent.)
    Wp3 = w_ref[R_WP3:R_WP3 + d, :]
    Wp2 = w_ref[R_WP2:R_WP2 + d, :]
    Wp1 = w_ref[R_WP1:R_WP1 + d, :]
    z = (jnp.dot(z0 + c1, Wp3, preferred_element_type=f32)
         + jnp.dot(c2, Wp2, preferred_element_type=f32)
         + jnp.dot(c3, Wp1, preferred_element_type=f32)
         + b_chain)
    z = jnp.where(jnp.isnan(z), 0.0, z)

    # ---- head: QNet fc1 -> relu -> out, nan->0 ------------------------------
    q1_w = w_ref[R_Q1W:R_Q1W + d, :]
    h = jnp.maximum(jnp.dot(z, q1_w, preferred_element_type=f32) + q1_b, 0.0)
    q2_w = w_ref[R_Q2W:R_Q2W + 2, :]                  # (2, hidden) torch layout
    logits = dot_nt(h, q2_w) + q2_b                   # (1, 2)
    logits_ref[...] = jnp.where(jnp.isnan(logits), 0.0, logits)
    z_ref[...] = z


# --------------------------------------------------------------- wrapper

def prepare_actor1_weights(params, nx, ny, for_next=False):
    """Pack everything the kernel needs into one (rows, d_model) f32 slab."""
    red_w_t = jnp.asarray(params["red_w_t"], jnp.float32)
    data_nums, d_model = red_w_t.shape
    hidden = params["eval_fc1_w_t"].shape[1]
    assert d_model == hidden, "weight packing assumes QNet hidden == d_model"
    assert data_nums <= d_model
    assert nx >= 2 and ny >= 2, "degenerate pair blocks not handled"
    # TODO(synk): handle nx < 2 or ny < 2 (empty pair blocks -> contribution 0)

    P1 = nx * (nx - 1) // 2
    S = nx + P1 + ny
    d = d_model

    eye = jnp.eye(d, dtype=jnp.float32)
    Wp = params["ffn_x_w_t"] + eye                    # residual folded in
    Wp2 = Wp @ Wp
    Wp3 = Wp2 @ Wp
    b = params["ffn_x_b"]
    b_chain = b @ (Wp2 + Wp) + b                      # folded chain bias

    if for_next:
        q1_w, q1_b = params["tgt_fc1_w_t"], params["tgt_fc1_b"]
        q2_w, q2_b = params["tgt_out_w"], params["tgt_out_b"]
    else:
        q1_w, q1_b = params["eval_fc1_w_t"], params["eval_fc1_b"]
        q2_w, q2_b = params["eval_out_w"], params["eval_out_b"]

    def pad_lanes(v):
        v = jnp.asarray(v, jnp.float32)
        return jnp.pad(v, ((0, 0), (0, d - v.shape[1])))

    # selector matrices (static, built on host)
    gx = np.zeros((S, nx), np.float32)
    gy = np.zeros((S, ny), np.float32)
    gx[:nx, :nx] = np.eye(nx, dtype=np.float32)
    p = nx
    for j in range(nx):
        for k in range(j + 1, nx):
            gx[p, j] = 1.0
            gx[p, k] = 1.0
            p += 1
    gy[nx + P1:, :] = np.eye(ny, dtype=np.float32)

    w_big = jnp.concatenate([
        jnp.tile(params["weight_x"], (nx, 1)),
        jnp.tile(params["weight_xy"], (P1, 1)),
        jnp.tile(params["weight_y"], (ny, 1))], axis=0)           # (S, d)

    wpack = jnp.concatenate([
        red_w_t,                                  # data_nums rows
        Wp3, Wp2, Wp,                             # 3*d rows
        q1_w,                                     # d rows
        pad_lanes(params["ln_gamma"]),
        pad_lanes(params["ln_beta"]),
        params["red_b"],
        b_chain,
        q1_b,
        pad_lanes(q2_b),
        q2_w,                                     # (2, hidden)
        pad_lanes(jnp.asarray(gx)),               # (S, d)
        pad_lanes(jnp.asarray(gy)),               # (S, d)
        w_big,                                    # (S, d)
    ], axis=0).astype(jnp.float32)
    return wpack


def actor1_forward(wpack, input_x, input_y, alpha):
    nx, data_nums = input_x.shape
    ny = input_y.shape[0]
    d_model = wpack.shape[1]
    P1 = nx * (nx - 1) // 2
    S = nx + P1 + ny
    assert nx >= 2 and ny >= 2
    assert wpack.shape[0] == data_nums + 4 * d_model + 8 + 3 * S, \
        "weight pack was built for a different (nx, ny)"

    alpha_arr = jnp.full((1, 1), alpha, jnp.float32)

    vmem = pl.BlockSpec(memory_space=pltpu.MemorySpace.VMEM)
    smem = pl.BlockSpec(memory_space=pltpu.MemorySpace.SMEM)

    logits, z = pl.pallas_call(
        functools.partial(actor1_fused_kernel, nx, ny, data_nums, d_model),
        out_shape=(jax.ShapeDtypeStruct((1, 2), jnp.float32),
                   jax.ShapeDtypeStruct((1, d_model), jnp.float32)),
        in_specs=[smem, vmem, vmem, vmem],
        out_specs=(vmem, vmem),
    )(alpha_arr, input_x, input_y, wpack)

    return logits[0], z[0]          # shapes (2,), (d_model,)


# ---------------------------------------------------------------- params

def make_params(key, data_nums, d_model, hidden_dim=128):
    ks = jax.random.split(key, 12)

    def u(k, shape, scale):
        return jax.random.uniform(k, shape, jnp.float32, -scale, scale)

    # torch-shaped weights are (out, in); stored transposed (in, out) for x @ W
    red_w = u(ks[0], (d_model, data_nums), 1.0 / np.sqrt(data_nums))
    ffn_w = u(ks[1], (d_model, d_model), 1.0 / np.sqrt(d_model))
    ev1_w = u(ks[2], (hidden_dim, d_model), 1.0 / np.sqrt(d_model))   # fanin_init
    ev2_w = -0.1 + 0.1 * jax.random.normal(ks[3], (2, hidden_dim))    # normal_(-w, w)
    tg1_w = u(ks[4], (hidden_dim, d_model), 1.0 / np.sqrt(d_model))
    tg2_w = -0.1 + 0.1 * jax.random.normal(ks[5], (2, hidden_dim))

    return dict(
        ln_gamma=jnp.ones((1, data_nums), jnp.float32),
        ln_beta=jnp.zeros((1, data_nums), jnp.float32),
        red_w_t=red_w.T, red_b=u(ks[6], (1, d_model), 1.0 / np.sqrt(data_nums)),
        weight_x=jax.random.normal(ks[7], (1, d_model)),
        weight_y=jax.random.normal(ks[8], (1, d_model)),
        weight_xy=jax.random.normal(ks[9], (1, d_model)),
        ffn_x_w_t=ffn_w.T, ffn_x_b=u(ks[10], (1, d_model), 1.0 / np.sqrt(d_model)),
        eval_fc1_w_t=ev1_w.T, eval_fc1_b=jnp.zeros((1, hidden_dim), jnp.float32),
        eval_out_w=ev2_w, eval_out_b=jnp.zeros((1, 2), jnp.float32),
        tgt_fc1_w_t=tg1_w.T, tgt_fc1_b=jnp.zeros((1, hidden_dim), jnp.float32),
        tgt_out_w=tg2_w, tgt_out_b=jnp.zeros((1, 2), jnp.float32),
    )


# ------------------------------------------------------------------ main

if __name__ == "__main__":
    data_nums = 32      # statistic_nums of each feature column
    d_model = 128
    feature_nums = 8    # unused in forward (kept for module-signature parity)
    alpha = 0.0
    nx, ny = 4, 3       # number of feature columns in input_x / input_y

    key = jax.random.PRNGKey(0)
    kp, kx, ky = jax.random.split(key, 3)
    params = make_params(kp, data_nums, d_model)

    input_x = jax.random.normal(kx, (nx, data_nums), jnp.float32)
    input_y = jax.random.normal(ky, (ny, data_nums), jnp.float32)

    # one-time host-side packing (for_next=False -> eval_net head)
    wpack = prepare_actor1_weights(params, nx, ny, for_next=False)

    fwd = jax.jit(actor1_forward)                 # alpha is traced: no recompile
    ops_logits, z = fwd(wpack, input_x, input_y, jnp.float32(alpha))
    jax.block_until_ready((ops_logits, z))

    assert ops_logits.shape == (2,) and z.shape == (d_model,)
    assert bool(jnp.all(jnp.isfinite(ops_logits))) and bool(jnp.all(jnp.isfinite(z)))
    print("KERNEL_OK")
</pallas_src>

<mosaic_0001>
module attributes {stable_mosaic.version = 11 : i64} {
  func.func @actor1_fused_kernel(%arg0: memref<1x1xf32, #tpu.memory_space<smem>>, %arg1: memref<4x32xf32, #tpu.memory_space<vmem>>, %arg2: memref<3x32xf32, #tpu.memory_space<vmem>>, %arg3: memref<591x128xf32, #tpu.memory_space<vmem>>, %arg4: memref<1x2xf32, #tpu.memory_space<vmem>>, %arg5: memref<1x128xf32, #tpu.memory_space<vmem>>) attributes {dimension_semantics = [], scalar_prefetch = 0 : i64, scratch_operands = 0 : i64, tpu.core_type = #tpu.core_type<tc>} {
    %c0 = arith.constant 0 : index
    %c0_0 = arith.constant 0 : index
    %0 = memref.load %arg0[%c0, %c0_0] : memref<1x1xf32, #tpu.memory_space<smem>>
    %c544 = arith.constant 544 : index
    %c0_1 = arith.constant 0 : index
    %1 = vector.load %arg3[%c544, %c0_1] : memref<591x128xf32, #tpu.memory_space<vmem>>, vector<1x32xf32>
    %c545 = arith.constant 545 : index
    %c0_2 = arith.constant 0 : index
    %2 = vector.load %arg3[%c545, %c0_2] : memref<591x128xf32, #tpu.memory_space<vmem>>, vector<1x32xf32>
    %c546 = arith.constant 546 : index
    %c0_3 = arith.constant 0 : index
    %3 = vector.load %arg3[%c546, %c0_3] : memref<591x128xf32, #tpu.memory_space<vmem>>, vector<1x128xf32>
    %c547 = arith.constant 547 : index
    %c0_4 = arith.constant 0 : index
    %4 = vector.load %arg3[%c547, %c0_4] : memref<591x128xf32, #tpu.memory_space<vmem>>, vector<1x128xf32>
    %c548 = arith.constant 548 : index
    %c0_5 = arith.constant 0 : index
    %5 = vector.load %arg3[%c548, %c0_5] : memref<591x128xf32, #tpu.memory_space<vmem>>, vector<1x128xf32>
    %c549 = arith.constant 549 : index
    %c0_6 = arith.constant 0 : index
    %6 = vector.load %arg3[%c549, %c0_6] : memref<591x128xf32, #tpu.memory_space<vmem>>, vector<1x2xf32>
    %c0_7 = arith.constant 0 : index
    %c0_8 = arith.constant 0 : index
    %7 = vector.load %arg3[%c0_7, %c0_8] : memref<591x128xf32, #tpu.memory_space<vmem>>, vector<32x128xf32>
    %c0_9 = arith.constant 0 : index
    %c0_10 = arith.constant 0 : index
    %8 = vector.load %arg1[%c0_9, %c0_10] : memref<4x32xf32, #tpu.memory_space<vmem>>, vector<4x32xf32>
    %cst = arith.constant dense<0.000000e+00> : vector<4xf32>
    %9 = vector.multi_reduction <add>, %8, %cst [1] : vector<4x32xf32> to vector<4xf32>
    %10 = vector.shape_cast %9 : vector<4xf32> to vector<4x1xf32>
    %cst_11 = arith.constant 3.200000e+01 : f32
    %11 = vector.broadcast %cst_11 : f32 to vector<4x1xf32>
    %12 = arith.divf %10, %11 : vector<4x1xf32>
    %13 = vector.broadcast %12 : vector<4x1xf32> to vector<4x32xf32>
    %14 = arith.subf %8, %13 : vector<4x32xf32>
    %15 = arith.mulf %14, %14 : vector<4x32xf32>
    %cst_12 = arith.constant dense<0.000000e+00> : vector<4xf32>
    %16 = vector.multi_reduction <add>, %15, %cst_12 [1] : vector<4x32xf32> to vector<4xf32>
    %17 = vector.shape_cast %16 : vector<4xf32> to vector<4x1xf32>
    %cst_13 = arith.constant 3.200000e+01 : f32
    %18 = vector.broadcast %cst_13 : f32 to vector<4x1xf32>
    %19 = arith.divf %17, %18 : vector<4x1xf32>
    %20 = vector.broadcast %12 : vector<4x1xf32> to vector<4x32xf32>
    %21 = arith.subf %8, %20 : vector<4x32xf32>
    %cst_14 = arith.constant 9.99999974E-6 : f32
    %22 = vector.broadcast %cst_14 : f32 to vector<4x1xf32>
    %23 = arith.addf %19, %22 : vector<4x1xf32>
    %24 = math.rsqrt %23 : vector<4x1xf32>
    %25 = vector.broadcast %24 : vector<4x1xf32> to vector<4x32xf32>
    %26 = arith.mulf %21, %25 : vector<4x32xf32>
    %27 = vector.broadcast %1 : vector<1x32xf32> to vector<4x32xf32>
    %28 = arith.mulf %26, %27 : vector<4x32xf32>
    %29 = vector.broadcast %2 : vector<1x32xf32> to vector<4x32xf32>
    %30 = arith.addf %28, %29 : vector<4x32xf32>
    %cst_15 = arith.constant dense<0.000000e+00> : vector<4x128xf32>
    %31 = tpu.matmul %30, %7, %cst_15 {dimension_numbers = #tpu.dot_dimension_numbers<[1], [0], [0], [1], [0, 0, 1, 1], [], []>} : vector<4x32xf32>, vector<32x128xf32>, vector<4x128xf32> -> vector<4x128xf32>
    %32 = vector.broadcast %3 : vector<1x128xf32> to vector<4x128xf32>
    %33 = arith.addf %31, %32 : vector<4x128xf32>
    %34 = arith.cmpf one, %33, %33 : vector<4x128xf32>
    %cst_16 = arith.constant 0.000000e+00 : f32
    %35 = vector.broadcast %cst_16 : f32 to vector<4x128xf32>
    %36 = arith.select %34, %35, %33 : vector<4x128xi1>, vector<4x128xf32>
    %c0_17 = arith.constant 0 : index
    %c0_18 = arith.constant 0 : index
    %37 = vector.load %arg2[%c0_17, %c0_18] : memref<3x32xf32, #tpu.memory_space<vmem>>, vector<3x32xf32>
    %cst_19 = arith.constant dense<0.000000e+00> : vector<3xf32>
    %38 = vector.multi_reduction <add>, %37, %cst_19 [1] : vector<3x32xf32> to vector<3xf32>
    %39 = vector.shape_cast %38 : vector<3xf32> to vector<3x1xf32>
    %cst_20 = arith.constant 3.200000e+01 : f32
    %40 = vector.broadcast %cst_20 : f32 to vector<3x1xf32>
    %41 = arith.divf %39, %40 : vector<3x1xf32>
    %42 = vector.broadcast %41 : vector<3x1xf32> to vector<3x32xf32>
    %43 = arith.subf %37, %42 : vector<3x32xf32>
    %44 = arith.mulf %43, %43 : vector<3x32xf32>
    %cst_21 = arith.constant dense<0.000000e+00> : vector<3xf32>
    %45 = vector.multi_reduction <add>, %44, %cst_21 [1] : vector<3x32xf32> to vector<3xf32>
    %46 = vector.shape_cast %45 : vector<3xf32> to vector<3x1xf32>
    %cst_22 = arith.constant 3.200000e+01 : f32
    %47 = vector.broadcast %cst_22 : f32 to vector<3x1xf32>
    %48 = arith.divf %46, %47 : vector<3x1xf32>
    %49 = vector.broadcast %41 : vector<3x1xf32> to vector<3x32xf32>
    %50 = arith.subf %37, %49 : vector<3x32xf32>
    %cst_23 = arith.constant 9.99999974E-6 : f32
    %51 = vector.broadcast %cst_23 : f32 to vector<3x1xf32>
    %52 = arith.addf %48, %51 : vector<3x1xf32>
    %53 = math.rsqrt %52 : vector<3x1xf32>
    %54 = vector.broadcast %53 : vector<3x1xf32> to vector<3x32xf32>
    %55 = arith.mulf %50, %54 : vector<3x32xf32>
    %56 = vector.broadcast %1 : vector<1x32xf32> to vector<3x32xf32>
    %57 = arith.mulf %55, %56 : vector<3x32xf32>
    %58 = vector.broadcast %2 : vector<1x32xf32> to vector<3x32xf32>
    %59 = arith.addf %57, %58 : vector<3x32xf32>
    %cst_24 = arith.constant dense<0.000000e+00> : vector<3x128xf32>
    %60 = tpu.matmul %59, %7, %cst_24 {dimension_numbers = #tpu.dot_dimension_numbers<[1], [0], [0], [1], [0, 0, 1, 1], [], []>} : vector<3x32xf32>, vector<32x128xf32>, vector<3x128xf32> -> vector<3x128xf32>
    %61 = vector.broadcast %3 : vector<1x128xf32> to vector<3x128xf32>
    %62 = arith.addf %60, %61 : vector<3x128xf32>
    %63 = arith.cmpf one, %62, %62 : vector<3x128xf32>
    %cst_25 = arith.constant 0.000000e+00 : f32
    %64 = vector.broadcast %cst_25 : f32 to vector<3x128xf32>
    %65 = arith.select %63, %64, %62 : vector<3x128xi1>, vector<3x128xf32>
    %cst_26 = arith.constant dense<0.000000e+00> : vector<128xf32>
    %66 = vector.multi_reduction <add>, %36, %cst_26 [0] : vector<4x128xf32> to vector<128xf32>
    %67 = vector.shape_cast %66 : vector<128xf32> to vector<1x128xf32>
    %cst_27 = arith.constant dense<0.000000e+00> : vector<128xf32>
    %68 = vector.multi_reduction <add>, %65, %cst_27 [0] : vector<3x128xf32> to vector<128xf32>
    %69 = vector.shape_cast %68 : vector<128xf32> to vector<1x128xf32>
    %70 = arith.addf %67, %69 : vector<1x128xf32>
    %cst_28 = arith.constant 0.142857149 : f32
    %71 = vector.broadcast %cst_28 : f32 to vector<1x128xf32>
    %72 = arith.mulf %70, %71 : vector<1x128xf32>
    %c552 = arith.constant 552 : index
    %c0_29 = arith.constant 0 : index
    %73 = vector.load %arg3[%c552, %c0_29] : memref<591x128xf32, #tpu.memory_space<vmem>>, vector<13x4xf32>
    %c565 = arith.constant 565 : index
    %c0_30 = arith.constant 0 : index
    %74 = vector.load %arg3[%c565, %c0_30] : memref<591x128xf32, #tpu.memory_space<vmem>>, vector<13x3xf32>
    %cst_31 = arith.constant dense<0.000000e+00> : vector<13x128xf32>
    %75 = tpu.matmul %73, %36, %cst_31 {dimension_numbers = #tpu.dot_dimension_numbers<[1], [0], [0], [1], [0, 0, 1, 1], [], []>} : vector<13x4xf32>, vector<4x128xf32>, vector<13x128xf32> -> vector<13x128xf32>
    %cst_32 = arith.constant dense<0.000000e+00> : vector<13x128xf32>
    %76 = tpu.matmul %74, %65, %cst_32 {dimension_numbers = #tpu.dot_dimension_numbers<[1], [0], [0], [1], [0, 0, 1, 1], [], []>} : vector<13x3xf32>, vector<3x128xf32>, vector<13x128xf32> -> vector<13x128xf32>
    %77 = arith.addf %75, %76 : vector<13x128xf32>
    %c578 = arith.constant 578 : index
    %c0_33 = arith.constant 0 : index
    %78 = vector.load %arg3[%c578, %c0_33] : memref<591x128xf32, #tpu.memory_space<vmem>>, vector<13x128xf32>
    %79 = arith.mulf %77, %78 : vector<13x128xf32>
    %80 = arith.mulf %77, %77 : vector<13x128xf32>
    %cst_34 = arith.constant dense<0.000000e+00> : vector<13xf32>
    %81 = vector.multi_reduction <add>, %80, %cst_34 [1] : vector<13x128xf32> to vector<13xf32>
    %82 = vector.shape_cast %81 : vector<13xf32> to vector<13x1xf32>
    %83 = math.rsqrt %82 : vector<13x1xf32>
    %84 = vector.broadcast %83 : vector<13x1xf32> to vector<13x128xf32>
    %85 = arith.mulf %77, %84 : vector<13x128xf32>
    %86 = arith.mulf %36, %36 : vector<4x128xf32>
    %cst_35 = arith.constant dense<0.000000e+00> : vector<4xf32>
    %87 = vector.multi_reduction <add>, %86, %cst_35 [1] : vector<4x128xf32> to vector<4xf32>
    %88 = vector.shape_cast %87 : vector<4xf32> to vector<4x1xf32>
    %89 = math.rsqrt %88 : vector<4x1xf32>
    %90 = vector.broadcast %89 : vector<4x1xf32> to vector<4x128xf32>
    %91 = arith.mulf %36, %90 : vector<4x128xf32>
    %92 = arith.mulf %65, %65 : vector<3x128xf32>
    %cst_36 = arith.constant dense<0.000000e+00> : vector<3xf32>
    %93 = vector.multi_reduction <add>, %92, %cst_36 [1] : vector<3x128xf32> to vector<3xf32>
    %94 = vector.shape_cast %93 : vector<3xf32> to vector<3x1xf32>
    %95 = math.rsqrt %94 : vector<3x1xf32>
    %96 = vector.broadcast %95 : vector<3x1xf32> to vector<3x128xf32>
    %97 = arith.mulf %65, %96 : vector<3x128xf32>
    %cst_37 = arith.constant dense<0.000000e+00> : vector<13x4xf32>
    %98 = tpu.matmul %79, %36, %cst_37 {dimension_numbers = #tpu.dot_dimension_numbers<[1], [1], [0], [0], [0, 0, 1, 0], [], []>} : vector<13x128xf32>, vector<4x128xf32>, vector<13x4xf32> -> vector<13x4xf32>
    %cst_38 = arith.constant dense<0.000000e+00> : vector<13x3xf32>
    %99 = tpu.matmul %79, %65, %cst_38 {dimension_numbers = #tpu.dot_dimension_numbers<[1], [1], [0], [0], [0, 0, 1, 0], [], []>} : vector<13x128xf32>, vector<3x128xf32>, vector<13x3xf32> -> vector<13x3xf32>
    %cst_39 = arith.constant dense<0.000000e+00> : vector<13x4xf32>
    %100 = tpu.matmul %85, %91, %cst_39 {dimension_numbers = #tpu.dot_dimension_numbers<[1], [1], [0], [0], [0, 0, 1, 0], [], []>} : vector<13x128xf32>, vector<4x128xf32>, vector<13x4xf32> -> vector<13x4xf32>
    %cst_40 = arith.constant dense<0.000000e+00> : vector<13x3xf32>
    %101 = tpu.matmul %85, %97, %cst_40 {dimension_numbers = #tpu.dot_dimension_numbers<[1], [1], [0], [0], [0, 0, 1, 0], [], []>} : vector<13x128xf32>, vector<3x128xf32>, vector<13x3xf32> -> vector<13x3xf32>
    %102 = vector.extract_strided_slice %98 {offsets = [0, 0], sizes = [4, 4], strides = [1, 1]} : vector<13x4xf32> to vector<4x4xf32>
    %103 = vector.extract_strided_slice %100 {offsets = [0, 0], sizes = [4, 4], strides = [1, 1]} : vector<13x4xf32> to vector<4x4xf32>
    %104 = vector.broadcast %0 : f32 to vector<4x4xf32>
    %105 = arith.cmpf olt, %103, %104 : vector<4x4xf32>
    %cst_41 = arith.constant 0.000000e+00 : f32
    %106 = vector.broadcast %cst_41 : f32 to vector<4x4xf32>
    %107 = arith.select %105, %106, %102 : vector<4x4xi1>, vector<4x4xf32>
    %108 = tpu.iota {dimensions = array<i32: 0>} : vector<4x4xi32>
    %109 = tpu.iota {dimensions = array<i32: 1>} : vector<4x4xi32>
    %110 = arith.cmpi sgt, %109, %108 : vector<4x4xi32>
    %cst_42 = arith.constant -1.000000e+30 : f32
    %111 = vector.broadcast %cst_42 : f32 to vector<4x4xf32>
    %112 = arith.select %110, %107, %111 : vector<4x4xi1>, vector<4x4xf32>
    %cst_43 = arith.constant dense<0xFF800000> : vector<4xf32>
    %113 = vector.multi_reduction <maximumf>, %112, %cst_43 [1] : vector<4x4xf32> to vector<4xf32>
    %114 = vector.shape_cast %113 : vector<4xf32> to vector<4x1xf32>
    %cst_44 = arith.constant dense<0xFF800000> : vector<1xf32>
    %115 = vector.multi_reduction <maximumf>, %114, %cst_44 [0] : vector<4x1xf32> to vector<1xf32>
    %116 = vector.shape_cast %115 : vector<1xf32> to vector<1x1xf32>
    %117 = vector.broadcast %116 : vector<1x1xf32> to vector<4x4xf32>
    %118 = arith.subf %112, %117 : vector<4x4xf32>
    %119 = math.exp %118 : vector<4x4xf32>
    %cst_45 = arith.constant dense<0.000000e+00> : vector<4xf32>
    %120 = vector.multi_reduction <add>, %119, %cst_45 [1] : vector<4x4xf32> to vector<4xf32>
    %121 = vector.shape_cast %120 : vector<4xf32> to vector<4x1xf32>
    %cst_46 = arith.constant dense<0.000000e+00> : vector<1xf32>
    %122 = vector.multi_reduction <add>, %121, %cst_46 [0] : vector<4x1xf32> to vector<1xf32>
    %123 = vector.shape_cast %122 : vector<1xf32> to vector<1x1xf32>
    %124 = vector.broadcast %123 : vector<1x1xf32> to vector<4x4xf32>
    %125 = arith.divf %119, %124 : vector<4x4xf32>
    %cst_47 = arith.constant dense<0.000000e+00> : vector<4xf32>
    %126 = vector.multi_reduction <add>, %125, %cst_47 [1] : vector<4x4xf32> to vector<4xf32>
    %127 = vector.shape_cast %126 : vector<4xf32> to vector<4x1xf32>
    %cst_48 = arith.constant dense<0.000000e+00> : vector<4xf32>
    %128 = vector.multi_reduction <add>, %125, %cst_48 [0] : vector<4x4xf32> to vector<4xf32>
    %129 = vector.shape_cast %128 : vector<4xf32> to vector<1x4xf32>
    %130 = vector.extract_strided_slice %99 {offsets = [4, 0], sizes = [6, 3], strides = [1, 1]} : vector<13x3xf32> to vector<6x3xf32>
    %131 = vector.extract_strided_slice %101 {offsets = [4, 0], sizes = [6, 3], strides = [1, 1]} : vector<13x3xf32> to vector<6x3xf32>
    %132 = vector.broadcast %0 : f32 to vector<6x3xf32>
    %133 = arith.cmpf olt, %131, %132 : vector<6x3xf32>
    %cst_49 = arith.constant 0.000000e+00 : f32
    %134 = vector.broadcast %cst_49 : f32 to vector<6x3xf32>
    %135 = arith.select %133, %134, %130 : vector<6x3xi1>, vector<6x3xf32>
    %cst_50 = arith.constant dense<0xFF800000> : vector<6xf32>
    %136 = vector.multi_reduction <maximumf>, %135, %cst_50 [1] : vector<6x3xf32> to vector<6xf32>
    %137 = vector.shape_cast %136 : vector<6xf32> to vector<6x1xf32>
    %cst_51 = arith.constant dense<0xFF800000> : vector<1xf32>
    %138 = vector.multi_reduction <maximumf>, %137, %cst_51 [0] : vector<6x1xf32> to vector<1xf32>
    %139 = vector.shape_cast %138 : vector<1xf32> to vector<1x1xf32>
    %140 = vector.broadcast %139 : vector<1x1xf32> to vector<6x3xf32>
    %141 = arith.subf %135, %140 : vector<6x3xf32>
    %142 = math.exp %141 : vector<6x3xf32>
    %cst_52 = arith.constant dense<0.000000e+00> : vector<6xf32>
    %143 = vector.multi_reduction <add>, %142, %cst_52 [1] : vector<6x3xf32> to vector<6xf32>
    %144 = vector.shape_cast %143 : vector<6xf32> to vector<6x1xf32>
    %cst_53 = arith.constant dense<0.000000e+00> : vector<1xf32>
    %145 = vector.multi_reduction <add>, %144, %cst_53 [0] : vector<6x1xf32> to vector<1xf32>
    %146 = vector.shape_cast %145 : vector<1xf32> to vector<1x1xf32>
    %147 = vector.broadcast %146 : vector<1x1xf32> to vector<6x3xf32>
    %148 = arith.divf %142, %147 : vector<6x3xf32>
    %cst_54 = arith.constant dense<0.000000e+00> : vector<6xf32>
    %149 = vector.multi_reduction <add>, %148, %cst_54 [1] : vector<6x3xf32> to vector<6xf32>
    %150 = vector.shape_cast %149 : vector<6xf32> to vector<6x1xf32>
    %cst_55 = arith.constant dense<0.000000e+00> : vector<3xf32>
    %151 = vector.multi_reduction <add>, %148, %cst_55 [0] : vector<6x3xf32> to vector<3xf32>
    %152 = vector.shape_cast %151 : vector<3xf32> to vector<1x3xf32>
    %153 = vector.extract_strided_slice %99 {offsets = [10, 0], sizes = [3, 3], strides = [1, 1]} : vector<13x3xf32> to vector<3x3xf32>
    %154 = vector.extract_strided_slice %101 {offsets = [10, 0], sizes = [3, 3], strides = [1, 1]} : vector<13x3xf32> to vector<3x3xf32>
    %155 = vector.broadcast %0 : f32 to vector<3x3xf32>
    %156 = arith.cmpf olt, %154, %155 : vector<3x3xf32>
    %cst_56 = arith.constant 0.000000e+00 : f32
    %157 = vector.broadcast %cst_56 : f32 to vector<3x3xf32>
    %158 = arith.select %156, %157, %153 : vector<3x3xi1>, vector<3x3xf32>
    %159 = tpu.iota {dimensions = array<i32: 0>} : vector<3x3xi32>
    %160 = tpu.iota {dimensions = array<i32: 1>} : vector<3x3xi32>
    %161 = arith.cmpi sgt, %160, %159 : vector<3x3xi32>
    %cst_57 = arith.constant -1.000000e+30 : f32
    %162 = vector.broadcast %cst_57 : f32 to vector<3x3xf32>
    %163 = arith.select %161, %158, %162 : vector<3x3xi1>, vector<3x3xf32>
    %cst_58 = arith.constant dense<0xFF800000> : vector<3xf32>
    %164 = vector.multi_reduction <maximumf>, %163, %cst_58 [1] : vector<3x3xf32> to vector<3xf32>
    %165 = vector.shape_cast %164 : vector<3xf32> to vector<3x1xf32>
    %cst_59 = arith.constant dense<0xFF800000> : vector<1xf32>
    %166 = vector.multi_reduction <maximumf>, %165, %cst_59 [0] : vector<3x1xf32> to vector<1xf32>
    %167 = vector.shape_cast %166 : vector<1xf32> to vector<1x1xf32>
    %168 = vector.broadcast %167 : vector<1x1xf32> to vector<3x3xf32>
    %169 = arith.subf %163, %168 : vector<3x3xf32>
    %170 = math.exp %169 : vector<3x3xf32>
    %cst_60 = arith.constant dense<0.000000e+00> : vector<3xf32>
    %171 = vector.multi_reduction <add>, %170, %cst_60 [1] : vector<3x3xf32> to vector<3xf32>
    %172 = vector.shape_cast %171 : vector<3xf32> to vector<3x1xf32>
    %cst_61 = arith.constant dense<0.000000e+00> : vector<1xf32>
    %173 = vector.multi_reduction <add>, %172, %cst_61 [0] : vector<3x1xf32> to vector<1xf32>
    %174 = vector.shape_cast %173 : vector<1xf32> to vector<1x1xf32>
    %175 = vector.broadcast %174 : vector<1x1xf32> to vector<3x3xf32>
    %176 = arith.divf %170, %175 : vector<3x3xf32>
    %cst_62 = arith.constant dense<0.000000e+00> : vector<3xf32>
    %177 = vector.multi_reduction <add>, %176, %cst_62 [1] : vector<3x3xf32> to vector<3xf32>
    %178 = vector.shape_cast %177 : vector<3xf32> to vector<3x1xf32>
    %cst_63 = arith.constant dense<0.000000e+00> : vector<3xf32>
    %179 = vector.multi_reduction <add>, %176, %cst_63 [0] : vector<3x3xf32> to vector<3xf32>
    %180 = vector.shape_cast %179 : vector<3xf32> to vector<1x3xf32>
    %181 = vector.extract_strided_slice %77 {offsets = [4, 0], sizes = [6, 128], strides = [1, 1]} : vector<13x128xf32> to vector<6x128xf32>
    %182 = vector.broadcast %127 : vector<4x1xf32> to vector<4x128xf32>
    %183 = arith.mulf %182, %36 : vector<4x128xf32>
    %cst_64 = arith.constant dense<0.000000e+00> : vector<128xf32>
    %184 = vector.multi_reduction <add>, %183, %cst_64 [0] : vector<4x128xf32> to vector<128xf32>
    %185 = vector.shape_cast %184 : vector<128xf32> to vector<1x128xf32>
    %cst_65 = arith.constant dense<0.000000e+00> : vector<1x128xf32>
    %186 = tpu.matmul %129, %36, %cst_65 {dimension_numbers = #tpu.dot_dimension_numbers<[1], [0], [0], [1], [0, 0, 1, 1], [], []>} : vector<1x4xf32>, vector<4x128xf32>, vector<1x128xf32> -> vector<1x128xf32>
    %187 = arith.addf %185, %186 : vector<1x128xf32>
    %188 = vector.broadcast %150 : vector<6x1xf32> to vector<6x128xf32>
    %189 = arith.mulf %188, %181 : vector<6x128xf32>
    %cst_66 = arith.constant dense<0.000000e+00> : vector<128xf32>
    %190 = vector.multi_reduction <add>, %189, %cst_66 [0] : vector<6x128xf32> to vector<128xf32>
    %191 = vector.shape_cast %190 : vector<128xf32> to vector<1x128xf32>
    %cst_67 = arith.constant dense<0.000000e+00> : vector<1x128xf32>
    %192 = tpu.matmul %152, %65, %cst_67 {dimension_numbers = #tpu.dot_dimension_numbers<[1], [0], [0], [1], [0, 0, 1, 1], [], []>} : vector<1x3xf32>, vector<3x128xf32>, vector<1x128xf32> -> vector<1x128xf32>
    %193 = arith.addf %191, %192 : vector<1x128xf32>
    %194 = vector.broadcast %178 : vector<3x1xf32> to vector<3x128xf32>
    %195 = arith.mulf %194, %65 : vector<3x128xf32>
    %cst_68 = arith.constant dense<0.000000e+00> : vector<128xf32>
    %196 = vector.multi_reduction <add>, %195, %cst_68 [0] : vector<3x128xf32> to vector<128xf32>
    %197 = vector.shape_cast %196 : vector<128xf32> to vector<1x128xf32>
    %cst_69 = arith.constant dense<0.000000e+00> : vector<1x128xf32>
    %198 = tpu.matmul %180, %65, %cst_69 {dimension_numbers = #tpu.dot_dimension_numbers<[1], [0], [0], [1], [0, 0, 1, 1], [], []>} : vector<1x3xf32>, vector<3x128xf32>, vector<1x128xf32> -> vector<1x128xf32>
    %199 = arith.addf %197, %198 : vector<1x128xf32>
    %c32 = arith.constant 32 : index
    %c0_70 = arith.constant 0 : index
    %200 = vector.load %arg3[%c32, %c0_70] : memref<591x128xf32, #tpu.memory_space<vmem>>, vector<128x128xf32>
    %c160 = arith.constant 160 : index
    %c0_71 = arith.constant 0 : index
    %201 = vector.load %arg3[%c160, %c0_71] : memref<591x128xf32, #tpu.memory_space<vmem>>, vector<128x128xf32>
    %c288 = arith.constant 288 : index
    %c0_72 = arith.constant 0 : index
    %202 = vector.load %arg3[%c288, %c0_72] : memref<591x128xf32, #tpu.memory_space<vmem>>, vector<128x128xf32>
    %203 = arith.addf %72, %187 : vector<1x128xf32>
    %cst_73 = arith.constant dense<0.000000e+00> : vector<1x128xf32>
    %204 = tpu.matmul %203, %200, %cst_73 {dimension_numbers = #tpu.dot_dimension_numbers<[1], [0], [0], [1], [0, 0, 1, 1], [], []>} : vector<1x128xf32>, vector<128x128xf32>, vector<1x128xf32> -> vector<1x128xf32>
    %cst_74 = arith.constant dense<0.000000e+00> : vector<1x128xf32>
    %205 = tpu.matmul %193, %201, %cst_74 {dimension_numbers = #tpu.dot_dimension_numbers<[1], [0], [0], [1], [0, 0, 1, 1], [], []>} : vector<1x128xf32>, vector<128x128xf32>, vector<1x128xf32> -> vector<1x128xf32>
    %206 = arith.addf %204, %205 : vector<1x128xf32>
    %cst_75 = arith.constant dense<0.000000e+00> : vector<1x128xf32>
    %207 = tpu.matmul %199, %202, %cst_75 {dimension_numbers = #tpu.dot_dimension_numbers<[1], [0], [0], [1], [0, 0, 1, 1], [], []>} : vector<1x128xf32>, vector<128x128xf32>, vector<1x128xf32> -> vector<1x128xf32>
    %208 = arith.addf %206, %207 : vector<1x128xf32>
    %209 = arith.addf %208, %4 : vector<1x128xf32>
    %210 = arith.cmpf one, %209, %209 : vector<1x128xf32>
    %cst_76 = arith.constant 0.000000e+00 : f32
    %211 = vector.broadcast %cst_76 : f32 to vector<1x128xf32>
    %212 = arith.select %210, %211, %209 : vector<1x128xi1>, vector<1x128xf32>
    %c416 = arith.constant 416 : index
    %c0_77 = arith.constant 0 : index
    %213 = vector.load %arg3[%c416, %c0_77] : memref<591x128xf32, #tpu.memory_space<vmem>>, vector<128x128xf32>
    %cst_78 = arith.constant dense<0.000000e+00> : vector<1x128xf32>
    %214 = tpu.matmul %212, %213, %cst_78 {dimension_numbers = #tpu.dot_dimension_numbers<[1], [0], [0], [1], [0, 0, 1, 1], [], []>} : vector<1x128xf32>, vector<128x128xf32>, vector<1x128xf32> -> vector<1x128xf32>
    %215 = arith.addf %214, %5 : vector<1x128xf32>
    %cst_79 = arith.constant 0.000000e+00 : f32
    %216 = vector.broadcast %cst_79 : f32 to vector<1x128xf32>
    %217 = arith.maximumf %215, %216 : vector<1x128xf32>
    %c550 = arith.constant 550 : index
    %c0_80 = arith.constant 0 : index
    %218 = vector.load %arg3[%c550, %c0_80] : memref<591x128xf32, #tpu.memory_space<vmem>>, vector<2x128xf32>
    %cst_81 = arith.constant dense<0.000000e+00> : vector<1x2xf32>
    %219 = tpu.matmul %217, %218, %cst_81 {dimension_numbers = #tpu.dot_dimension_numbers<[1], [1], [0], [0], [0, 0, 1, 0], [], []>} : vector<1x128xf32>, vector<2x128xf32>, vector<1x2xf32> -> vector<1x2xf32>
    %220 = arith.addf %219, %6 : vector<1x2xf32>
    %221 = arith.cmpf one, %220, %220 : vector<1x2xf32>
    %cst_82 = arith.constant 0.000000e+00 : f32
    %222 = vector.broadcast %cst_82 : f32 to vector<1x2xf32>
    %223 = arith.select %221, %222, %220 : vector<1x2xi1>, vector<1x2xf32>
    %c0_83 = arith.constant 0 : index
    %c0_84 = arith.constant 0 : index
    %224 = vector.load %arg4[%c0_83, %c0_84] : memref<1x2xf32, #tpu.memory_space<vmem>>, vector<1x2xf32>
    tpu.vector_store %arg4[%c0_83, %c0_84], %223 {strides = array<i32>} : memref<1x2xf32, #tpu.memory_space<vmem>>, vector<1x2xf32>,
    %c0_85 = arith.constant 0 : index
    %c0_86 = arith.constant 0 : index
    %225 = vector.load %arg5[%c0_85, %c0_86] : memref<1x128xf32, #tpu.memory_space<vmem>>, vector<1x128xf32>
    tpu.vector_store %arg5[%c0_85, %c0_86], %212 {strides = array<i32>} : memref<1x128xf32, #tpu.memory_space<vmem>>, vector<1x128xf32>,
    return
  }
}

</mosaic_0001>

<bundles_post_ra>
// kernel: actor1_forward.1
= control target key start
LH: loop header
LB: loop body
LE: loop exit
PB: predicated region body
PF: predicated region fallthrough
CT: control target
= control target key end

     0   :  { %12 = vsyncpa [#allocation4], 0  ;;  %s1235_s0 = inlined_call_operand.<no memory space> [shape: f32[1,1], index: 0, kind: input, shape index: {}]   ;;  %s1236_s1 = inlined_call_operand.hbm [shape: f32[4,32], index: 1, kind: input, shape index: {}]   ;;  %s1237_s2 = inlined_call_operand.vmem [shape: f32[3,32], index: 2, kind: input, shape index: {}]   ;;  %s1238_s3 = inlined_call_operand.hbm [shape: f32[591,128], index: 3, kind: input, shape index: {}]   ;;  %s1239_s4 = inlined_call_operand.hbm [shape: f32[1,2], index: 4, kind: output, shape index: {0}]   ;;  %s1240_s5 = inlined_call_operand.hbm [shape: f32[1,128], index: 5, kind: output, shape index: {1}]  }
   0x1   :  { %13 = vsyncpa [#allocation7], 0 }
   0x2   :  { %14 = vsyncpa [#allocation5], 0 }
   0x3   :  { %15 = vsyncpa [#allocation10], 0  ;;  %s23_s20 = sshll.u32 %s1236_s1, 4  ;;  %s1087_s21 = smov [#allocation3]   ;;  %s24_s20 = int_to_ptr.hbm [resolvable:$true] %s23_s20 }
   0x4   :  { %s25_s22 = sshll.u32 %s1087_s21, 4  ;;  %s35_s25 = sshll.u32 %s1238_s3, 4  ;;  %s26_s22 = int_to_ptr.vmem [resolvable:$true] %s25_s22  ;;  %s36_s25 = int_to_ptr.hbm [resolvable:$true] %s35_s25 }
   0x5   :  { %28 = dma.hbm_to_vmem [thread:$0]  %s24_s20, 64, %s26_s22, [#allocation4]  }
   0x6   :  { %s1088_s26 = smov [#allocation6]   ;;  %s1089_s28 = smov 128  }
   0x7   :  { %s37_s27 = sshll.u32 %s1088_s26, 4  ;;  %s1090_s29 = smov 8   ;;  %s38_s27 = int_to_ptr.vmem [resolvable:$true] %s37_s27 }
   0x8   :  { %43 = dma.hbm_to_vmem [thread:$0]  %s36_s25, 9472, %s38_s27, [#allocation7], %s1089_s28, %s1089_s28, %s1090_s29  }
   0x9   :  { %1079 = dma.done.wait [#allocation4], 64  }
   0xa   :  { %1080 = vsyncadd [#allocation4], 4294967232 }
   0xb   :  { %1081 = dma.done.wait [#allocation7], 9472  }
   0xc   :  { %1082 = vsyncadd [#allocation7], 4294957824  ;;  %vm64_vm0 = vcmask 257024   ;;  %v63_v0 = vld [vmem:[#allocation3] sm:$0xf]  ;;  %vm126_vm1 = vcmask 256000  }
   0xd   :  { %v65_v1 = vsel %vm64_vm0, %v63_v0, 0.0  ;;  %v125_v2 = vld [vmem:[%s1237_s2] sm:$0x7]  ;;  %v1091_v4 = vmov 32.0   ;;  %v61_v22 = vld [vmem:[#allocation6 + $0x10] sm:$0xff]  ;;  %v60_v23 = vld [vmem:[#allocation6 + $0x8] sm:$0xff] }
   0xe   :  { %66 = vadd.xlane.f32.xlu0 %v65_v1  ;;  %v127_v3 = vsel %vm126_vm1, %v125_v2, 0.0  ;;  %955 = vrcp.f32 %v1091_v4  ;;  %v62_v21 = vld [vmem:[#allocation6 + $0x18] sm:$0xff]  ;;  %v59_v24 = vld [vmem:[#allocation6] sm:$0xff]  ;;  %vm99_vm7 = vcmask 261120   ;;  %vm176_vm10 = vcmask 1043456   ;;  %v194_v56 = vld [vmem:[#allocation6 + $0x228] sm:$0xff] }
   0xf   :  { %115 = vmatpush.msra.mxu0 %v62_v21  ;;  %166 = vmatpush.msra.mxu1 %v62_v21  ;;  %v952_v39 = vld [vmem:[#allocation6 + $0x220] ss:$0 sm:$0xff]  ;;  %v953_v43 = vld [vmem:[#allocation6 + $0x221] ss:$0 sm:$0xff]  ;;  %v954_v53 = vld [vmem:[#allocation6 + $0x222] ss:$0 sm:$0xff] }
  0x10   :  { %vm231_vm12 = vcmask 31744   ;;  %vm1242_vm14 = vcmask 1042432   ;;  %v196_v62 = vld [vmem:[#allocation6 + $0x235] sm:$0xff]  ;;  %v264_v21 = vld [vmem:[#allocation6 + $0x242] sm:$0xff]  ;;  %s909_s9 = sshll.u32 %s1240_s5, 4  ;;  %s1093_s10 = smov [#allocation8]   ;;  %s910_s9 = int_to_ptr.hbm [resolvable:$true] %s909_s9 }
  0x11   :  { %116 = vmatpush.msra.mxu0 %v61_v22  ;;  %167 = vmatpush.msra.mxu1 %v61_v22  ;;  %s896_s11 = sshll.u32 %s1093_s10, 4  ;;  %s898_s14 = sshll.u32 %s1239_s4, 4  ;;  %s897_s11 = int_to_ptr.vmem [resolvable:$true] %s896_s11  ;;  %s899_s14 = int_to_ptr.hbm [resolvable:$true] %s898_s14 }
  0x13   :  { %117 = vmatpush.msra.mxu0 %v60_v23  ;;  %168 = vmatpush.msra.mxu1 %v60_v23 }
  0x14   :  { %v956_v5 = vpop.eup %955 }
  0x15   :  { %v69_v6 = vmul.f32 32.0, %v956_v5  ;;  %vm73_vm2 = vweird.f32 %v956_v5  ;;  %118 = vmatpush.msra.mxu0 %v59_v24  ;;  %169 = vmatpush.msra.mxu1 %v59_v24 }
  0x16   :  { %128 = vadd.xlane.f32.xlu0 %v127_v3  ;;  %v197_v3 = vld [vmem:[#allocation6 + $0x23d] sm:$0x1f] }
  0x17   :  { %v70_v7 = vsub.f32 1.0, %v69_v6 }
  0x19   :  { %v71_v8 = vmul.f32 %v956_v5, %v70_v7 }
  0x1b   :  { %v72_v9 = vadd.f32 %v956_v5, %v71_v8 }
  0x1d   :  { %v74_v10 = vsel %vm73_vm2, %v956_v5, %v72_v9 }
  0x81   :  { %v67_v11 = vpop.xlane.xlu0 %66 }
  0x82   :  { %v75_v12 = vmul.f32 %v74_v10, %v67_v11 }
  0x84   :  { %v76_v13 = vsub.f32 %v63_v0, %v75_v12  ;;  %v195_v0 = vld [vmem:[#allocation6 + $0x230] sm:$0x1f] }
  0x86   :  { %v77_v14 = vmul.f32 %v76_v13, %v76_v13 }
  0x88   :  { %v78_v15 = vsel %vm64_vm0, %v77_v14, 0.0  ;;  %vm198_vm0 = vcmask 23552  }
  0x89   :  { %79 = vadd.xlane.f32.xlu1 %v78_v15  ;;  %v129_v16 = vpop.xlane.xlu0 %128 }
  0x8a   :  { %v130_v17 = vmul.f32 %v129_v16, %v74_v10 }
  0x8c   :  { %v131_v18 = vsub.f32 %v125_v2, %v130_v17 }
  0x8e   :  { %v132_v19 = vmul.f32 %v131_v18, %v131_v18 }
  0x90   :  { %v133_v20 = vsel %vm126_vm1, %v132_v19, 0.0 }
  0x91   :  { %134 = vadd.xlane.f32.xlu1 %v133_v20 }
  0xfc   :  { %v80_v25 = vpop.xlane.xlu1 %79 }
  0xfd   :  { %v81_v26 = vmul.f32 %v80_v25, %v74_v10 }
  0xff   :  { %v82_v27 = vadd.f32 1e-05, %v81_v26 }
 0x101   :  { %957 = vrsqrt.f32 %v82_v27  ;;  %vm89_vm4 = vweird.f32 %v82_v27 }
 0x104   :  { %v135_v28 = vpop.xlane.xlu1 %134 }
 0x105   :  { %v136_v29 = vmul.f32 %v135_v28, %v74_v10 }
 0x107   :  { %v958_v30 = vpop.eup %957  ;;  %v137_v31 = vadd.f32 1e-05, %v136_v29 }
 0x108   :  { %v84_v32 = vmul.f32 %v958_v30, %v82_v27  ;;  %vm90_vm3 = vweird.f32 %v958_v30 }
 0x109   :  { %959 = vrsqrt.f32 %v137_v31  ;;  %vm91_vm5 = vmor %vm89_vm4, %vm90_vm3  ;;  %vm144_vm8 = vweird.f32 %v137_v31 }
 0x10a   :  { %v85_v33 = vmul.f32 %v958_v30, %v84_v32 }
 0x10c   :  { %v86_v34 = vmul.f32 0.5, %v85_v33 }
 0x10e   :  { %v87_v35 = vsub.f32 1.5, %v86_v34 }
 0x10f   :  { %v960_v36 = vpop.eup %959 }
 0x110   :  { %v88_v37 = vmul.f32 %v958_v30, %v87_v35  ;;  %v139_v38 = vmul.f32 %v960_v36, %v137_v31  ;;  %vm145_vm6 = vweird.f32 %v960_v36 }
 0x111   :  { %vm146_vm9 = vmor %vm144_vm8, %vm145_vm6  ;;  %vm272_vm8 = vcmask 1044480  }
 0x112   :  { %v92_v40 = vsel %vm91_vm5, %v958_v30, %v88_v37  ;;  %v140_v41 = vmul.f32 %v960_v36, %v139_v38  ;;  %v265_v30 = vld [vmem:[#allocation6 + $0x24a] sm:$0x1f] }
 0x113   :  { %v93_v42 = vmul.f32 %v92_v40, %v76_v13 }
 0x114   :  { %v141_v44 = vmul.f32 0.5, %v140_v41 }
 0x115   :  { %v95_v45 = vmul.f32 %v952_v39, %v93_v42 }
 0x116   :  { %v142_v46 = vsub.f32 1.5, %v141_v44 }
 0x117   :  { %v97_v47 = vadd.f32 %v953_v43, %v95_v45 }
 0x118   :  { %v143_v48 = vmul.f32 %v960_v36, %v142_v46 }
 0x119   :  { %925 = vmatmul.msk.f32.vlgmr.msra.gmra.mxu0 %vm99_vm7, %v97_v47 }
 0x11a   :  { %v147_v49 = vsel %vm146_vm9, %v960_v36, %v143_v48 }
 0x11b   :  { %v148_v50 = vmul.f32 %v147_v49, %v131_v18 }
 0x11d   :  { %v149_v51 = vmul.f32 %v952_v39, %v148_v50 }
 0x11f   :  { %v150_v52 = vadd.f32 %v953_v43, %v149_v51 }
 0x121   :  { %926 = vmatmul.msk.f32.vlgmr.msra.gmra.mxu1 %vm99_vm7, %v150_v52 }
 0x196   :  { %v120_v54 = vpop.f32.mrf.mxu0 }
 0x197   :  { %v121_v55 = vadd.f32 %v954_v53, %v120_v54 }
 0x199   :  { %vm123_vm11 = vcmp.ne.f32.partialorder %v121_v55, %v121_v55 }
 0x19a   :  { %v1137_v57 = vsel %vm123_vm11, 0.0, %v121_v55  ;;  %vm933_vm13 = vmneg %vm123_vm11 }
 0x19b   :  { %930 = vmatpush.msk.msra.mxu3 %vm176_vm10, %v1137_v57  ;;  %934 = vmatpush.xpose.msk.msrb.mxu0 %vm933_vm13, %v121_v55  ;;  %v298_v58 = vmul.f32 %v1137_v57, %v1137_v57  ;;  %v421_v55 = vlaneseq }
 0x19c   :  { %931 = vmatmul.msk.f32.vlgmr.msra.gmra.mxu3 %vm231_vm12, %v194_v56  ;;  %v418_v56 = vstv %s1235_s0  ;;  %s1092_s0 = smov [#allocation9]  }
 0x19d   :  { %v299_v59 = vsel %vm176_vm10, %v298_v58, 0.0  ;;  %s907_s6 = sshll.u32 %s1092_s0, 4  ;;  %s908_s6 = int_to_ptr.vmem [resolvable:$true] %s907_s6 }
 0x19e   :  { %v171_v60 = vpop.f32.mrf.mxu1  ;;  %300 = vadd.xlane.f32.xlu1 %v299_v59 }
 0x19f   :  { %937 = vmatpush.msk.msra.mxu0 %vm176_vm10, %v1137_v57  ;;  %v172_v61 = vadd.f32 %v954_v53, %v171_v60 }
 0x1a1   :  { %vm174_vm15 = vcmp.ne.f32.partialorder %v172_v61, %v172_v61 }
 0x1a2   :  { %v1147_v63 = vsel %vm174_vm15, 0.0, %v172_v61  ;;  %vm935_vm1 = vmneg %vm174_vm15 }
 0x1a3   :  { %927 = vmatpush.msk.msra.mxu2 %vm1242_vm14, %v1147_v63  ;;  %936 = vmatpush.xpose.msk.msrb.mxu1 %vm935_vm1, %v172_v61  ;;  %v313_v1 = vmul.f32 %v1147_v63, %v1147_v63  ;;  %v422_v61 = vshrl.u32 %v421_v55, 7 }
 0x1a4   :  { %928 = vmatmul.msk.f32.vlgmr.msra.gmra.mxu2 %vm198_vm0, %v196_v62  ;;  %932 = vmatmul.msk.f32.gmra.mxu3 %vm231_vm12, %v195_v0  ;;  %v424_v62 = vand.u32 127, %v421_v55 }
 0x1a5   :  { %v314_v2 = vsel %vm1242_vm14, %v313_v1, 0.0 }
 0x1a6   :  { %315 = vadd.xlane.f32.xlu2 %v314_v2 }
 0x1a7   :  { %939 = vmatpush.msk.msra.mxu1 %vm1242_vm14, %v1147_v63 }
 0x1ac   :  { %929 = vmatmul.msk.f32.gmra.mxu2 %vm198_vm0, %v197_v3 }
 0x211   :  { %v301_v4 = vpop.xlane.xlu1 %300 }
 0x212   :  { %961 = vrsqrt.f32 %v301_v4  ;;  %vm308_vm3 = vweird.f32 %v301_v4 }
 0x218   :  { %v962_v5 = vpop.eup %961 }
 0x219   :  { %v303_v6 = vmul.f32 %v962_v5, %v301_v4  ;;  %v316_v7 = vpop.xlane.xlu2 %315  ;;  %vm309_vm2 = vweird.f32 %v962_v5 }
 0x21a   :  { %963 = vrsqrt.f32 %v316_v7  ;;  %vm310_vm4 = vmor %vm308_vm3, %vm309_vm2  ;;  %vm323_vm6 = vweird.f32 %v316_v7  ;;  %vm479_vm3 = vcmask 23556  }
 0x21b   :  { %v304_v8 = vmul.f32 %v962_v5, %v303_v6 }
 0x21d   :  { %v305_v9 = vmul.f32 0.5, %v304_v8 }
 0x21f   :  { %v306_v10 = vsub.f32 1.5, %v305_v9  ;;  %v258_v16 = vpop.f32.mrf.mxu3 }
 0x220   :  { %v964_v11 = vpop.eup %963 }
 0x221   :  { %v318_v12 = vmul.f32 %v964_v11, %v316_v7  ;;  %v307_v13 = vmul.f32 %v962_v5, %v306_v10  ;;  %vm324_vm5 = vweird.f32 %v964_v11 }
 0x222   :  { %vm325_vm7 = vmor %vm323_vm6, %vm324_vm5  ;;  %vm425_vm6 = vcmp.gt.s32.totalorder %v424_v62, %v422_v61 }
 0x223   :  { %v319_v14 = vmul.f32 %v964_v11, %v318_v12  ;;  %v311_v15 = vsel %vm310_vm4, %v962_v5, %v307_v13 }
 0x224   :  { %v312_v17 = vmul.f32 %v311_v15, %v1137_v57 }
 0x225   :  { %v320_v18 = vmul.f32 0.5, %v319_v14 }
 0x226   :  { %388 = vmatpush.xpose.msrb.mxu2 %v312_v17 }
 0x227   :  { %v321_v19 = vsub.f32 1.5, %v320_v18  ;;  %v225_v20 = vpop.f32.mrf.mxu2  ;;  %v261_v28 = vpop.f32.mrf.mxu3 }
 0x228   :  { %v1162_v22 = vadd.f32 %v258_v16, %v225_v20 }
 0x229   :  { %v322_v23 = vmul.f32 %v964_v11, %v321_v19 }
 0x22a   :  { %941 = vmatpush.msk.msra.mxu2 %vm1242_vm14, %v1147_v63  ;;  %v268_v24 = vmul.f32 %v1162_v22, %v1162_v22  ;;  %v266_v25 = vmul.f32 %v264_v21, %v1162_v22 }
 0x22b   :  { %v326_v26 = vsel %vm325_vm7, %v964_v11, %v322_v23  ;;  %vm427_vm7 = vcmask 27648  }
 0x22c   :  { %270 = vadd.xlane.f32.xlu2 %v268_v24  ;;  %344 = vmatmul.f32.vlgmr.msrb.gmra.mxu0 %v266_v25  ;;  %v327_v27 = vmul.f32 %v326_v26, %v1147_v63 }
 0x22d   :  { %366 = vmatmul.f32.vlgmr.msrb.gmra.mxu1 %v266_v25 }
 0x22e   :  { %410 = vmatpush.xpose.msrb.mxu3 %v327_v27 }
 0x22f   :  { %v228_v29 = vpop.f32.mrf.mxu2 }
 0x230   :  { %v1168_v31 = vadd.f32 %v261_v28, %v228_v29 }
 0x232   :  { %v267_v32 = vmul.f32 %v265_v30, %v1168_v31  ;;  %v269_v33 = vmul.f32 %v1168_v31, %v1168_v31 }
 0x234   :  { %347 = vmatmul.f32.gmra.mxu0 %v267_v32  ;;  %v273_v34 = vsel %vm272_vm8, %v269_v33, 0.0  ;;  %vm483_vm8 = vcmask 17408  }
 0x235   :  { %369 = vmatmul.f32.gmra.mxu1 %v267_v32  ;;  %274 = vadd.xlane.f32.xlu0 %v273_v34 }
 0x29f   :  { %v271_v35 = vpop.xlane.xlu2 %270 }
 0x2a0   :  { %965 = vrsqrt.f32 %v271_v35  ;;  %vm282_vm11 = vweird.f32 %v271_v35 }
 0x2a6   :  { %v966_v36 = vpop.eup %965 }
 0x2a7   :  { %v277_v37 = vmul.f32 %v966_v36, %v271_v35  ;;  %vm283_vm9 = vweird.f32 %v966_v36 }
 0x2a8   :  { %v275_v38 = vpop.xlane.xlu0 %274  ;;  %vm284_vm13 = vmor %vm282_vm11, %vm283_vm9  ;;  %vm564_vm11 = vcmask 18432  }
 0x2a9   :  { %v278_v39 = vmul.f32 %v966_v36, %v277_v37  ;;  %967 = vrsqrt.f32 %v275_v38  ;;  %v345_v40 = vpop.f32.mrf.mxu0  ;;  %vm292_vm1 = vweird.f32 %v275_v38 }
 0x2aa   :  { %v367_v58 = vpop.f32.mrf.mxu1 }
 0x2ab   :  { %v279_v41 = vmul.f32 0.5, %v278_v39 }
 0x2ad   :  { %v280_v42 = vsub.f32 1.5, %v279_v41 }
 0x2af   :  { %v968_v43 = vpop.eup %967  ;;  %v281_v44 = vmul.f32 %v966_v36, %v280_v42 }
 0x2b0   :  { %v287_v45 = vmul.f32 %v968_v43, %v275_v38  ;;  %vm293_vm15 = vweird.f32 %v968_v43 }
 0x2b1   :  { %v348_v46 = vpop.f32.mrf.mxu0  ;;  %v285_v47 = vsel %vm284_vm13, %v966_v36, %v281_v44  ;;  %vm294_vm2 = vmor %vm292_vm1, %vm293_vm15  ;;  %vm487_vm13 = vcmask 1047556   ;;  %vm489_vm15 = vcmask 1041408   ;;  %vm1241_vm1 = vcmask 1045504  }
 0x2b2   :  { %v288_v48 = vmul.f32 %v968_v43, %v287_v45  ;;  %v296_v49 = vmul.f32 %v285_v47, %v1162_v22  ;;  %v370_v6 = vpop.f32.mrf.mxu1 }
 0x2b4   :  { %v289_v50 = vmul.f32 0.5, %v288_v48  ;;  %389 = vmatmul.f32.vlgmr.msrb.gmra.mxu2 %v296_v49  ;;  %411 = vmatmul.f32.vlgmr.msrb.gmra.mxu3 %v296_v49 }
 0x2b6   :  { %v290_v51 = vsub.f32 1.5, %v289_v50 }
 0x2b8   :  { %v291_v52 = vmul.f32 %v968_v43, %v290_v51 }
 0x2ba   :  { %v295_v53 = vsel %vm294_vm2, %v968_v43, %v291_v52 }
 0x2bb   :  { %v297_v54 = vmul.f32 %v295_v53, %v1168_v31 }
 0x2bd   :  { %392 = vmatmul.f32.gmra.mxu2 %v297_v54  ;;  %414 = vmatmul.f32.gmra.mxu3 %v297_v54 }
 0x337   :  { %v390_v59 = vpop.f32.mrf.mxu2  ;;  %v412_v60 = vpop.f32.mrf.mxu3 }
 0x338   :  { %vm475_vm4 = vcmp.lt.f32.partialorder %v412_v60, %v418_v56  ;;  %vm419_vm5 = vcmp.lt.f32.partialorder %v390_v59, %v418_v56 }
 0x339   :  { %v477_v0 = vsel %vm475_vm4, 0.0, %v367_v58  ;;  %v420_v2 = vsel %vm419_vm5, 0.0, %v345_v40 }
 0x33a   :  { %v480_v1 = vsel %vm479_vm3, %v477_v0, -inf  ;;  %v426_v3 = vsel %vm425_vm6, %v420_v2, -1e+30 }
 0x33b   :  { %481 = vmax.xlane.f32.xlu2 %v480_v1  ;;  %v428_v8 = vsel %vm427_vm7, %v426_v3, -inf }
 0x340   :  { %v393_v4 = vpop.f32.mrf.mxu2  ;;  %v415_v5 = vpop.f32.mrf.mxu3 }
 0x341   :  { %vm476_vm9 = vcmp.lt.f32.partialorder %v415_v5, %v418_v56 }
 0x342   :  { %v478_v7 = vsel %vm476_vm9, 0.0, %v370_v6 }
 0x343   :  { %429 = vmax.xlane.f32.xlu2 %v428_v8  ;;  %v484_v9 = vsel %vm483_vm8, %v478_v7, -inf  ;;  %v561_v10 = vrot.slane %v478_v7, 2 }
 0x344   :  { %485 = vmax.xlane.f32.xlu0 %v484_v9 }
 0x345   :  { %v563_v11 = vsel %vm425_vm6, %v561_v10, -1e+30 }
 0x346   :  { %v565_v12 = vsel %vm564_vm11, %v563_v11, -inf }
 0x347   :  { %566 = vmax.xlane.f32.xlu1 %v565_v12 }
 0x3ae   :  { %v482_v13 = vpop.xlane.xlu2 %481 }
 0x3af   :  { %v488_v17 = vsel %vm487_vm13, %v482_v13, -inf }
 0x3b6   :  { %v430_v14 = vpop.xlane.xlu2 %429 }
 0x3b7   :  { %v431_v15 = vsel %vm176_vm10, %v430_v14, -inf  ;;  %v486_v16 = vpop.xlane.xlu0 %485 }
 0x3b8   :  { %v432_v18 = vrot.slane %v431_v15, 4  ;;  %v490_v19 = vsel %vm489_vm15, %v486_v16, -inf }
 0x3b9   :  { %v491_v20 = vmax.f32 %v488_v17, %v490_v19 }
 0x3ba   :  { %v433_v21 = vmax.f32 %v431_v15, %v432_v18  ;;  %v567_v23 = vpop.xlane.xlu1 %566 }
 0x3bb   :  { %v492_v24 = vrot.slane %v491_v20, 4  ;;  %v568_v25 = vsel %vm1242_vm14, %v567_v23, -inf }
 0x3bc   :  { %v434_v26 = vrot.slane %v433_v21, 2  ;;  %v569_v27 = vrot.slane %v568_v25, 4 }
 0x3bd   :  { %v493_v28 = vmax.f32 %v491_v20, %v492_v24 }
 0x3be   :  { %v435_v29 = vmax.f32 %v433_v21, %v434_v26  ;;  %v570_v30 = vmax.f32 %v568_v25, %v569_v27  ;;  %v746_v26 = vld [vmem:[#allocation6 + $0x118] sm:$0xff] }
 0x3bf   :  { %v494_v32 = vrot.slane %v493_v28, 2  ;;  %v762_v27 = vld [vmem:[#allocation6 + $0x198] sm:$0xff]  ;;  %764 = vmatpush.msra.mxu3 %v746_v26 }
 0x3c0   :  { %v571_v33 = vrot.slane %v570_v30, 2  ;;  %v436_v35 = vrot.slane %v435_v29, 1  ;;  %804 = vmatpush.msrb.mxu1 %v762_v27 }
 0x3c1   :  { %v495_v34 = vmax.f32 %v493_v28, %v494_v32  ;;  %v745_v28 = vld [vmem:[#allocation6 + $0x110] sm:$0xff] }
 0x3c2   :  { %v572_v36 = vmax.f32 %v570_v30, %v571_v33  ;;  %v437_v40 = vmax.f32 %v435_v29, %v436_v35  ;;  %v761_v32 = vld [vmem:[#allocation6 + $0x190] sm:$0xff]  ;;  %765 = vmatpush.msra.mxu3 %v745_v28 }
 0x3c3   :  { %v496_v37 = vrot.slane %v495_v34, 1  ;;  %805 = vmatpush.msrb.mxu1 %v761_v32  ;;  %v760_v32 = vld [vmem:[#allocation6 + $0x188] sm:$0xff] }
 0x3c4   :  { %v573_v38 = vrot.slane %v572_v36, 1  ;;  %v438_v47 = vsub.f32 %v426_v3, %v437_v40 }
 0x3c5   :  { %v497_v39 = vmax.f32 %v495_v34, %v496_v37  ;;  %806 = vmatpush.msrb.mxu1 %v760_v32 }
 0x3c6   :  { %v574_v41 = vmax.f32 %v572_v36, %v573_v38  ;;  %v439_v49 = vmul.f32 1.442695, %v438_v47 }
 0x3c7   :  { %v499_v42 = vsub.f32 %v478_v7, %v497_v39  ;;  %v498_v43 = vsub.f32 %v477_v0, %v497_v39 }
 0x3c8   :  { %v575_v44 = vsub.f32 %v563_v11, %v574_v41 }
 0x3c9   :  { %v502_v45 = vmul.f32 1.442695, %v499_v42  ;;  %v500_v46 = vmul.f32 1.442695, %v498_v43 }
 0x3ca   :  { %v576_v48 = vmul.f32 1.442695, %v575_v44 }
 0x3cb   :  { %969 = vpow2.f32 %v502_v45 }
 0x3cc   :  { %971 = vpow2.f32 %v500_v46 }
 0x3cd   :  { %973 = vpow2.f32 %v576_v48 }
 0x3ce   :  { %975 = vpow2.f32 %v439_v49 }
 0x3d1   :  { %v1184_v50 = vpop.eup %969 }
 0x3d2   :  { %v1186_v51 = vpop.eup %971  ;;  %v507_v52 = vsel %vm483_vm8, %v1184_v50, 0.0 }
 0x3d3   :  { %v1190_v53 = vpop.eup %973  ;;  %508 = vadd.xlane.f32.xlu1 %v507_v52  ;;  %v504_v54 = vsel %vm479_vm3, %v1186_v51, 0.0 }
 0x3d4   :  { %505 = vadd.xlane.f32.xlu0 %v504_v54  ;;  %v578_v55 = vsel %vm564_vm11, %v1190_v53, 0.0  ;;  %v1196_v56 = vpop.eup %975 }
 0x3d5   :  { %579 = vadd.xlane.f32.xlu2 %v578_v55  ;;  %v441_v58 = vsel %vm427_vm7, %v1196_v56, 0.0 }
 0x3dc   :  { %442 = vadd.xlane.f32.xlu0 %v441_v58 }
 0x446   :  { %v509_v59 = vpop.xlane.xlu1 %508 }
 0x447   :  { %v513_v60 = vrot.slane %v509_v59, 4  ;;  %v506_v61 = vpop.xlane.xlu0 %505 }
 0x448   :  { %v512_v62 = vrot.slane %v506_v61, 4  ;;  %v580_v0 = vpop.xlane.xlu2 %579 }
 0x449   :  { %v581_v1 = vsel %vm1242_vm14, %v580_v0, 0.0 }
 0x44a   :  { %v514_v2 = vsel %vm176_vm10, %v512_v62, %v513_v60  ;;  %v582_v3 = vrot.slane %v581_v1, 4 }
 0x44b   :  { %v517_v4 = vsel %vm1241_vm1, %v514_v2, 0.0 }
 0x44c   :  { %v518_v5 = vrot.slane %v517_v4, 4  ;;  %v583_v6 = vadd.f32 %v582_v3, %v581_v1 }
 0x44e   :  { %v519_v7 = vadd.f32 %v518_v5, %v517_v4  ;;  %v584_v8 = vrot.slane %v583_v6, 2 }
 0x44f   :  { %v443_v9 = vpop.xlane.xlu0 %442 }
 0x450   :  { %v520_v10 = vrot.slane %v519_v7, 2  ;;  %v585_v11 = vadd.f32 %v584_v8, %v583_v6  ;;  %v444_v12 = vsel %vm176_vm10, %v443_v9, 0.0 }
 0x451   :  { %v445_v13 = vrot.slane %v444_v12, 4 }
 0x452   :  { %v521_v14 = vadd.f32 %v520_v10, %v519_v7  ;;  %v586_v15 = vrot.slane %v585_v11, 1 }
 0x453   :  { %v446_v16 = vadd.f32 %v445_v13, %v444_v12 }
 0x454   :  { %v522_v17 = vrot.slane %v521_v14, 1  ;;  %v587_v18 = vadd.f32 %v586_v15, %v585_v11 }
 0x455   :  { %v447_v19 = vrot.slane %v446_v16, 2 }
 0x456   :  { %v523_v20 = vadd.f32 %v522_v17, %v521_v14  ;;  %977 = vrcp.f32 %v587_v18  ;;  %v597_v36 = vand.u32 2147483647, %v587_v18  ;;  %v599_v37 = vand.u32 2147483648, %v587_v18 }
 0x457   :  { %v448_v21 = vadd.f32 %v447_v19, %v446_v16  ;;  %vm593_vm5 = vweird.f32 %v587_v18 }
 0x458   :  { %979 = vrcp.f32 %v523_v20  ;;  %v535_v38 = vand.u32 2147483648, %v523_v20  ;;  %v533_v42 = vand.u32 2147483647, %v523_v20  ;;  %vm529_vm6 = vweird.f32 %v523_v20 }
 0x459   :  { %v449_v23 = vrot.slane %v448_v21, 1  ;;  %vm598_vm13 = vcmp.eq.f32.partialorder %v597_v36, 8.507059e+37  ;;  %v600_v46 = vor.u32 1.1754944e-38, %v599_v37  ;;  %v742_v36 = vld [vmem:[#allocation6 + $0xf8] sm:$0xff]  ;;  %v728_v37 = vld [vmem:[#allocation6 + $0x88] sm:$0xff] }
 0x45a   :  { %v536_v47 = vor.u32 1.1754944e-38, %v535_v38  ;;  %vm534_vm1 = vcmp.eq.f32.partialorder %v533_v42, 8.507059e+37  ;;  %v758_v38 = vld [vmem:[#allocation6 + $0x178] sm:$0xff]  ;;  %v740_v42 = vld [vmem:[#allocation6 + $0xe8] sm:$0xff] }
 0x45b   :  { %v450_v24 = vadd.f32 %v449_v23, %v448_v21 }
 0x45c   :  { %v978_v25 = vpop.eup %977 }
 0x45d   :  { %981 = vrcp.f32 %v450_v24  ;;  %v589_v30 = vmul.f32 %v978_v25, %v587_v18  ;;  %vm594_vm2 = vweird.f32 %v978_v25  ;;  %v462_v49 = vand.u32 2147483648, %v450_v24 }
 0x45e   :  { %v980_v29 = vpop.eup %979  ;;  %vm595_vm9 = vmor %vm593_vm5, %vm594_vm2  ;;  %v460_v55 = vand.u32 2147483647, %v450_v24  ;;  %vm552_vm2 = vcmask 21504  }
 0x45f   :  { %v525_v33 = vmul.f32 %v980_v29, %v523_v20  ;;  %v590_v34 = vsub.f32 1.0, %v589_v30  ;;  %vm530_vm4 = vweird.f32 %v980_v29  ;;  %v463_v2 = vor.u32 1.1754944e-38, %v462_v49  ;;  %v730_v30 = vld [vmem:[#allocation6 + $0x98] sm:$0xff]  ;;  %v724_v49 = vld [vmem:[#allocation6 + $0x68] sm:$0xff] }
 0x460   :  { %vm531_vm15 = vmor %vm529_vm6, %vm530_vm4  ;;  %vm456_vm4 = vweird.f32 %v450_v24  ;;  %vm461_vm5 = vcmp.eq.f32.partialorder %v460_v55, 8.507059e+37  ;;  %784 = vmatpush.msrb.mxu0 %v730_v30  ;;  %v723_v55 = vld [vmem:[#allocation6 + $0x60] sm:$0xff] }
 0x461   :  { %v526_v35 = vsub.f32 1.0, %v525_v33  ;;  %v591_v39 = vmul.f32 %v978_v25, %v590_v34  ;;  %v743_v33 = vld [vmem:[#allocation6 + $0x100] sm:$0xff]  ;;  %v729_v34 = vld [vmem:[#allocation6 + $0x90] sm:$0xff] }
 0x462   :  { %785 = vmatpush.msrb.mxu0 %v729_v34 }
 0x463   :  { %v982_v40 = vpop.eup %981  ;;  %v527_v41 = vmul.f32 %v980_v29, %v526_v35  ;;  %v592_v44 = vadd.f32 %v978_v25, %v591_v39  ;;  %v759_v35 = vld [vmem:[#allocation6 + $0x180] sm:$0xff]  ;;  %v741_v39 = vld [vmem:[#allocation6 + $0xf0] sm:$0xff] }
 0x464   :  { %v452_v43 = vmul.f32 %v982_v40, %v450_v24  ;;  %vm457_vm14 = vweird.f32 %v982_v40  ;;  %807 = vmatpush.msrb.mxu1 %v759_v35  ;;  %786 = vmatpush.msrb.mxu0 %v728_v37  ;;  %v838_v37 = vld [vmem:[#allocation6 + $0x1f0] sm:$0xff] }
 0x465   :  { %v528_v45 = vadd.f32 %v980_v29, %v527_v41  ;;  %v596_v52 = vsel %vm595_vm9, %v978_v25, %v592_v44  ;;  %v757_v41 = vld [vmem:[#allocation6 + $0x170] sm:$0xff]  ;;  %v756_v44 = vld [vmem:[#allocation6 + $0x168] sm:$0xff] }
 0x466   :  { %v453_v48 = vsub.f32 1.0, %v452_v43  ;;  %v601_v58 = vsel %vm598_vm13, %v600_v46, %v596_v52  ;;  %808 = vmatpush.msrb.mxu1 %v758_v38  ;;  %v726_v43 = vld [vmem:[#allocation6 + $0x78] sm:$0xff]  ;;  %v725_v46 = vld [vmem:[#allocation6 + $0x70] sm:$0xff] }
 0x467   :  { %v532_v54 = vsel %vm531_vm15, %v980_v29, %v528_v45  ;;  %v602_v61 = vmul.f32 %v1190_v53, %v601_v58  ;;  %v744_v29 = vld [vmem:[#allocation6 + $0x108] sm:$0xff]  ;;  %v739_v45 = vld [vmem:[#allocation6 + $0xe0] sm:$0xff]  ;;  %v754_v52 = vld [vmem:[#allocation6 + $0x158] sm:$0xff] }
 0x468   :  { %v537_v59 = vsel %vm534_vm1, %v536_v47, %v532_v54  ;;  %v454_v60 = vmul.f32 %v982_v40, %v453_v48  ;;  %vm458_vm1 = vmor %vm456_vm4, %vm457_vm14  ;;  %766 = vmatpush.msra.mxu3 %v744_v29  ;;  %809 = vmatpush.msrb.mxu1 %v757_v41  ;;  %v755_v47 = vld [vmem:[#allocation6 + $0x160] sm:$0xff]  ;;  %v738_v48 = vld [vmem:[#allocation6 + $0xd8] sm:$0xff]  ;;  %vm1244_vm14 = vcmask 1045504  }
 0x469   :  { %v538_v62 = vmul.f32 %v1186_v51, %v537_v59  ;;  %v539_v0 = vmul.f32 %v1184_v50, %v537_v59  ;;  %v603_v3 = vsel %vm564_vm11, %v602_v61, 0.0  ;;  %v737_v54 = vld [vmem:[#allocation6 + $0xd0] sm:$0xff]  ;;  %v736_v59 = vld [vmem:[#allocation6 + $0xc8] sm:$0xff] }
 0x46a   :  { %v455_v1 = vadd.f32 %v982_v40, %v454_v60  ;;  %v606_v51 = vrot.slane %v603_v3, 4  ;;  %767 = vmatpush.msra.mxu3 %v743_v33  ;;  %810 = vmatpush.msrb.mxu1 %v756_v44  ;;  %v753_v58 = vld [vmem:[#allocation6 + $0x150] sm:$0xff]  ;;  %v722_v60 = vld [vmem:[#allocation6 + $0x58] sm:$0xff]  ;;  %v752_v61 = vld [vmem:[#allocation6 + $0x148] sm:$0xff] }
 0x46b   :  { %v540_v4 = vsel %vm479_vm3, %v538_v62, 0.0  ;;  %v548_v5 = vrot.slane %v538_v62, 4  ;;  %v543_v6 = vsel %vm483_vm8, %v539_v0, 0.0  ;;  %v549_v7 = vrot.slane %v539_v0, 4  ;;  %v735_v62 = vld [vmem:[#allocation6 + $0xc0] sm:$0xff]  ;;  %v721_v0 = vld [vmem:[#allocation6 + $0x50] sm:$0xff] }
 0x46c   :  { %541 = vadd.xlane.f32.xlu1 %v540_v4  ;;  %544 = vadd.xlane.f32.xlu2 %v543_v6  ;;  %v459_v53 = vsel %vm458_vm1, %v982_v40, %v455_v1  ;;  %v607_v11 = vadd.f32 %v606_v51, %v603_v3  ;;  %v727_v40 = vld [vmem:[#allocation6 + $0x80] sm:$0xff]  ;;  %v750_v4 = vld [vmem:[#allocation6 + $0x138] sm:$0xff] }
 0x46d   :  { %v550_v50 = vsel %vm176_vm10, %v548_v5, %v549_v7  ;;  %v464_v8 = vsel %vm461_vm5, %v463_v2, %v459_v53  ;;  %768 = vmatpush.msra.mxu3 %v742_v36  ;;  %787 = vmatpush.msrb.mxu0 %v727_v40  ;;  %v751_v1 = vld [vmem:[#allocation6 + $0x140] sm:$0xff]  ;;  %v734_v2 = vld [vmem:[#allocation6 + $0xb8] sm:$0xff]  ;;  %v733_v5 = vld [vmem:[#allocation6 + $0xb0] sm:$0xff] }
 0x46e   :  { %v553_v9 = vsel %vm552_vm2, %v550_v50, 0.0  ;;  %v465_v10 = vmul.f32 %v1196_v56, %v464_v8  ;;  %v608_v14 = vrot.slane %v607_v11, 2  ;;  %811 = vmatpush.msrb.mxu1 %v755_v47  ;;  %v719_v6 = vld [vmem:[#allocation6 + $0x40] sm:$0xff]  ;;  %v749_v7 = vld [vmem:[#allocation6 + $0x130] sm:$0xff]  ;;  %v732_v53 = vld [vmem:[#allocation6 + $0xa8] sm:$0xff] }
 0x46f   :  { %v554_v12 = vrot.slane %v553_v9, 4  ;;  %769 = vmatpush.msra.mxu3 %v741_v39  ;;  %788 = vmatpush.msrb.mxu0 %v726_v43  ;;  %v718_v51 = vld [vmem:[#allocation6 + $0x38] sm:$0xff]  ;;  %v748_v50 = vld [vmem:[#allocation6 + $0x128] sm:$0xff]  ;;  %v731_v8 = vld [vmem:[#allocation6 + $0xa0] sm:$0xff] }
 0x470   :  { %v466_v13 = vsel %vm427_vm7, %v465_v10, 0.0  ;;  %v609_v17 = vadd.f32 %v608_v14, %v607_v11  ;;  %812 = vmatpush.msrb.mxu1 %v754_v52  ;;  %v747_v11 = vld [vmem:[#allocation6 + $0x120] sm:$0xff]  ;;  %v839_v33 = vld [vmem:[#allocation6 + $0x1f8] sm:$0xff]  ;;  %vm888_vm7 = vcmask 8192  }
 0x471   :  { %v555_v15 = vadd.f32 %v554_v12, %v553_v9  ;;  %467 = vadd.xlane.f32.xlu0 %v466_v13  ;;  %v469_v16 = vrot.slane %v466_v13, 4  ;;  %770 = vmatpush.msra.mxu3 %v740_v42  ;;  %v717_v9 = vld [vmem:[#allocation6 + $0x30] sm:$0xff]  ;;  %v716_v12 = vld [vmem:[#allocation6 + $0x28] sm:$0xff]  ;;  %v715_v14 = vld [vmem:[#allocation6 + $0x20] sm:$0xff] }
 0x472   :  { %v610_v20 = vrot.slane %v609_v17, 1  ;;  %789 = vmatpush.msrb.mxu0 %v725_v46  ;;  %813 = vmatpush.msrb.mxu1 %v753_v58  ;;  %v837_v42 = vld [vmem:[#allocation6 + $0x1e8] sm:$0xff]  ;;  %v836_v47 = vld [vmem:[#allocation6 + $0x1e0] sm:$0xff] }
 0x473   :  { %v556_v18 = vrot.slane %v555_v15, 2  ;;  %v470_v19 = vadd.f32 %v469_v16, %v466_v13  ;;  %771 = vmatpush.msra.mxu3 %v739_v45  ;;  %v177_v13 = vsel %vm176_vm10, %v1137_v57, 0.0 }
 0x474   :  { %604 = vadd.xlane.f32.xlu1 %v603_v3  ;;  %v611_v24 = vadd.f32 %v610_v20, %v609_v17  ;;  %790 = vmatpush.msrb.mxu0 %v724_v49  ;;  %v720_v3 = vld [vmem:[#allocation6 + $0x48] sm:$0xff] }
 0x475   :  { %v557_v21 = vadd.f32 %v556_v18, %v555_v15  ;;  %v471_v23 = vrot.slane %v470_v19, 2  ;;  %772 = vmatpush.msra.mxu3 %v738_v48  ;;  %814 = vmatpush.msrb.mxu1 %v752_v61  ;;  %v843_v18 = vld [vmem:[#allocation6 + $0x218] sm:$0xff] }
 0x476   :  { %942 = vmatmul.msk.f32.vlgmr.msra.gmra.mxu2 %vm198_vm0, %v611_v24  ;;  %791 = vmatpush.msrb.mxu0 %v723_v55  ;;  %v841_v24 = vld [vmem:[#allocation6 + $0x208] sm:$0xff] }
 0x477   :  { %v472_v25 = vadd.f32 %v471_v23, %v470_v19  ;;  %v558_v26 = vrot.slane %v557_v21, 1  ;;  %773 = vmatpush.msra.mxu3 %v737_v54  ;;  %815 = vmatpush.msrb.mxu1 %v751_v1  ;;  %v842_v19 = vld [vmem:[#allocation6 + $0x210] sm:$0xff]  ;;  %v178_v23 = vrot.slane %v177_v13, 4  ;;  %v835_v54 = vld [vmem:[#allocation6 + $0x1d8] sm:$0xff] }
 0x478   :  { %792 = vmatpush.msrb.mxu0 %v722_v60  ;;  %844 = vmatpush.msrb.mxu2 %v843_v18  ;;  %v829_v18 = vld [vmem:[#allocation6 + $0x1a8] sm:$0xff] }
 0x479   :  { %v473_v56 = vrot.slane %v472_v25, 1  ;;  %v559_v27 = vadd.f32 %v558_v26, %v557_v21  ;;  %774 = vmatpush.msra.mxu3 %v736_v59  ;;  %816 = vmatpush.msrb.mxu1 %v750_v4 }
 0x47a   :  { %793 = vmatpush.msrb.mxu0 %v721_v0  ;;  %845 = vmatpush.msrb.mxu2 %v842_v19  ;;  %v828_v19 = vld [vmem:[#allocation6 + $0x1a0] sm:$0xff] }
 0x47b   :  { %v474_v28 = vadd.f32 %v473_v56, %v472_v25  ;;  %940 = vmatmul.msk.f32.vlgmr.msra.gmra.mxu1 %vm198_vm0, %v559_v27  ;;  %775 = vmatpush.msra.mxu3 %v735_v62  ;;  %v840_v27 = vld [vmem:[#allocation6 + $0x200] sm:$0xff] }
 0x47c   :  { %794 = vmatpush.msrb.mxu0 %v720_v3  ;;  %817 = vmatpush.msrb.mxu1 %v749_v7 }
 0x47d   :  { %938 = vmatmul.msk.f32.vlgmr.msra.gmra.mxu0 %vm231_vm12, %v474_v28  ;;  %776 = vmatpush.msra.mxu3 %v734_v2  ;;  %vm1243_vm12 = vcmask 1042432  }
 0x47e   :  { %795 = vmatpush.msrb.mxu0 %v719_v6  ;;  %818 = vmatpush.msrb.mxu1 %v748_v50  ;;  %v185_v10 = vsel %vm1243_vm12, %v1147_v63, 0.0  ;;  %vm1245_vm0 = vmmov %vm1243_vm12 }
 0x47f   :  { %777 = vmatpush.msra.mxu3 %v733_v5  ;;  %v186_v17 = vrot.slane %v185_v10, 4  ;;  %846 = vmatpush.msrb.mxu2 %v841_v24 }
 0x480   :  { %796 = vmatpush.msrb.mxu0 %v718_v51  ;;  %819 = vmatpush.msrb.mxu1 %v747_v11 }
 0x481   :  { %778 = vmatpush.msra.mxu3 %v732_v53  ;;  %v187_v56 = vadd.f32 %v186_v17, %v185_v10  ;;  %847 = vmatpush.msrb.mxu2 %v840_v27  ;;  %v830_v17 = vld [vmem:[#allocation6 + $0x1b0] sm:$0xff] }
 0x482   :  { %797 = vmatpush.msrb.mxu0 %v717_v9 }
 0x483   :  { %779 = vmatpush.msra.mxu3 %v731_v8  ;;  %v188_v36 = vrot.slane %v187_v56, 2  ;;  %848 = vmatpush.msrb.mxu2 %v839_v33  ;;  %v58_v33 = vld [vmem:[#allocation6 + $0x225] sm:$0x1] }
 0x484   :  { %798 = vmatpush.msrb.mxu0 %v716_v12 }
 0x485   :  { %849 = vmatpush.msrb.mxu2 %v838_v37  ;;  %v189_v46 = vadd.f32 %v188_v36, %v187_v56 }
 0x486   :  { %799 = vmatpush.msrb.mxu0 %v715_v14  ;;  %v833_v14 = vld [vmem:[#allocation6 + $0x1c8] sm:$0xff] }
 0x487   :  { %850 = vmatpush.msrb.mxu2 %v837_v42  ;;  %v190_v58 = vrot.slane %v189_v46, 1 }
 0x489   :  { %851 = vmatpush.msrb.mxu2 %v836_v47  ;;  %v191_v0 = vadd.f32 %v190_v58, %v189_v46 }
 0x48b   :  { %852 = vmatpush.msrb.mxu2 %v835_v54 }
 0x4df   :  { %v542_v15 = vpop.xlane.xlu1 %541  ;;  %v545_v16 = vpop.xlane.xlu2 %544 }
 0x4e0   :  { %v644_v20 = vmul.f32 %v542_v15, %v1162_v22  ;;  %v645_v21 = vmul.f32 %v545_v16, %v1168_v31  ;;  %v179_v22 = vadd.f32 %v178_v23, %v177_v13  ;;  %v834_v13 = vld [vmem:[#allocation6 + $0x1d0] sm:$0xff]  ;;  %v832_v15 = vld [vmem:[#allocation6 + $0x1c0] sm:$0xff]  ;;  %v831_v16 = vld [vmem:[#allocation6 + $0x1b8] sm:$0xff] }
 0x4e1   :  { %853 = vmatpush.msrb.mxu2 %v834_v13 }
 0x4e2   :  { %v648_v25 = vrot.slane %v644_v20, 4  ;;  %v649_v26 = vrot.slane %v645_v21, 4  ;;  %v180_v41 = vrot.slane %v179_v22, 2  ;;  %v865_v20 = vld [vmem:[#allocation6 + $0x226] sm:$0x3] }
 0x4e3   :  { %854 = vmatpush.msrb.mxu2 %v833_v14  ;;  %881 = vmatpush.xpose.msrb.mxu3 %v865_v20 }
 0x4e4   :  { %v650_v28 = vsel %vm176_vm10, %v648_v25, %v649_v26  ;;  %v468_v29 = vpop.xlane.xlu0 %467  ;;  %v181_v52 = vadd.f32 %v180_v41, %v179_v22  ;;  %v56_v26 = vld [vmem:[#allocation6 + $0x223] sm:$0x1] }
 0x4e5   :  { %v652_v30 = vsel %vm1244_vm14, %v650_v28, 0.0  ;;  %v612_v32 = vmul.f32 %v468_v29, %v1137_v57  ;;  %855 = vmatpush.msrb.mxu2 %v832_v15  ;;  %v57_v29 = vld [vmem:[#allocation6 + $0x224] sm:$0x1] }
 0x4e6   :  { %v653_v31 = vrot.slane %v652_v30, 4  ;;  %v182_v59 = vrot.slane %v181_v52, 1 }
 0x4e7   :  { %v613_v34 = vsel %vm176_vm10, %v612_v32, 0.0  ;;  %v605_v35 = vpop.xlane.xlu1 %604  ;;  %856 = vmatpush.msrb.mxu2 %v831_v16 }
 0x4e8   :  { %v614_v38 = vrot.slane %v613_v34, 4  ;;  %v683_v39 = vmul.f32 %v605_v35, %v1147_v63  ;;  %v654_v40 = vadd.f32 %v653_v31, %v652_v30  ;;  %v183_v1 = vadd.f32 %v182_v59, %v181_v52 }
 0x4e9   :  { %857 = vmatpush.msrb.mxu2 %v830_v17 }
 0x4ea   :  { %v615_v43 = vadd.f32 %v614_v38, %v613_v34  ;;  %v684_v44 = vsel %vm1245_vm0, %v683_v39, 0.0  ;;  %v655_v45 = vrot.slane %v654_v40, 2  ;;  %v192_v5 = vadd.f32 %v191_v0, %v183_v1 }
 0x4eb   :  { %v685_v57 = vrot.slane %v684_v44, 4  ;;  %858 = vmatpush.msrb.mxu2 %v829_v18 }
 0x4ec   :  { %v616_v48 = vrot.slane %v615_v43, 2  ;;  %v656_v63 = vadd.f32 %v655_v45, %v654_v40  ;;  %v193_v9 = vmul.f32 0.14285715, %v192_v5 }
 0x4ed   :  { %v686_v49 = vadd.f32 %v685_v57, %v684_v44  ;;  %859 = vmatpush.msrb.mxu2 %v828_v19 }
 0x4ee   :  { %v617_v60 = vadd.f32 %v616_v48, %v615_v43  ;;  %v657_v62 = vrot.slane %v656_v63, 1 }
 0x4ef   :  { %v687_v55 = vrot.slane %v686_v49, 2 }
 0x4f0   :  { %v618_v2 = vrot.slane %v617_v60, 1  ;;  %v658_v4 = vadd.f32 %v657_v62, %v656_v63 }
 0x4f1   :  { %v688_v61 = vadd.f32 %v687_v55, %v686_v49 }
 0x4f2   :  { %v619_v53 = vadd.f32 %v618_v2, %v617_v60 }
 0x4f3   :  { %v689_v3 = vrot.slane %v688_v61, 1 }
 0x4f5   :  { %v690_v51 = vadd.f32 %v689_v3, %v688_v61 }
 0x4f8   :  { %v679_v6 = vpop.f32.mrf.mxu1 }
 0x4f9   :  { %v682_v7 = vadd.f32 %v679_v6, %v658_v4  ;;  %v711_v8 = vpop.f32.mrf.mxu2 }
 0x4fa   :  { %v640_v50 = vpop.f32.mrf.mxu0  ;;  %v714_v11 = vadd.f32 %v711_v8, %v690_v51 }
 0x4fb   :  { %v643_v10 = vadd.f32 %v640_v50, %v619_v53  ;;  %780 = vmatmul.f32.vlgmr.msra.gmra.mxu3 %v682_v7 }
 0x4fc   :  { %820 = vmatmul.f32.vlgmr.msrb.gmra.mxu1 %v714_v11 }
 0x4fd   :  { %v763_v12 = vadd.f32 %v643_v10, %v193_v9 }
 0x4ff   :  { %800 = vmatmul.f32.vlgmr.msrb.gmra.mxu0 %v763_v12 }
 0x579   :  { %v821_v25 = vpop.f32.mrf.mxu1 }
 0x57c   :  { %v801_v21 = vpop.f32.mrf.mxu0 }
 0x57e   :  { %v781_v23 = vpop.f32.mrf.mxu3 }
 0x57f   :  { %v802_v24 = vadd.f32 %v801_v21, %v781_v23 }
 0x581   :  { %v824_v56 = vadd.f32 %v821_v25, %v802_v24 }
 0x583   :  { %v825_v27 = vadd.f32 %v824_v56, %v56_v26 }
 0x585   :  { %vm826_vm10 = vcmp.ne.f32.partialorder %v825_v27, %v825_v27 }
 0x586   :  { %vm943_vm3 = vmneg %vm826_vm10  ;;  %v827_v28 = vsel %vm826_vm10, 0.0, %v825_v27 }
 0x587   :  { %944 = vmatmul.msk.f32.vlgmr.msrb.gmra.mxu2 %vm943_vm3, %v825_v27  ;;  %890 = vst [vmem:[#allocation9] sm:$0x1] %v827_v28 }
 0x588   :  { %912 = dma.vmem_to_hbm [thread:$0]  %s908_s6, 16, %s910_s9, [#allocation10]  }
 0x60a   :  { %v861_v30 = vpop.f32.mrf.mxu2 }
 0x60b   :  { %v862_v32 = vadd.f32 %v861_v30, %v57_v29 }
 0x60d   :  { %v864_v22 = vmax.f32 %v862_v32, 0.0 }
 0x60f   :  { %882 = vmatmul.f32.vlgmr.msrb.gmra.mxu3 %v864_v22 }
 0x692   :  { %v883_v31 = vpop.f32.mrf.mxu3 }
 0x693   :  { %v884_v34 = vadd.f32 %v883_v31, %v58_v33 }
 0x695   :  { %vm886_vm8 = vcmp.ne.f32.partialorder %v884_v34, %v884_v34 }
 0x696   :  { %v887_v35 = vsel %vm886_vm8, 0.0, %v884_v34 }
 0x697   :  { %889 = vst.msk [vmem:[#allocation8] sm:$0x1] %vm888_vm7, %v887_v35 }
 0x698   :  { %901 = dma.vmem_to_hbm [thread:$0]  %s897_s11, 16, %s899_s14, [#allocation5]  }
 0x699   :  { %1083 = dma.done.wait [#allocation5], 16  }
 0x69a   :  { %1084 = vsyncadd [#allocation5], 4294967280 }
 0x69b   :  { %1085 = dma.done.wait [#allocation10], 16  }
 0x69c   :  { %1086 = vsyncadd [#allocation10], 4294967280 }
 0x69d   :  { %921 = vsyncpa [#allocation4], 1 }
 0x69e   :  { %922 = vsyncpa [#allocation7], 1 }
 0x69f   :  { %923 = vsyncpa [#allocation5], 1 }
 0x6a0   :  { %924 = vsyncpa [#allocation10], 1 }

</bundles_post_ra>
